<compile_context>
chip_gen: v7x
topology: tpu7x:2x2x1
jax: 0.10.0
libtpu: 0.0.40
codegen_flags: <defaults>
</compile_context>

<pallas_src>
import functools
import math

import numpy as np
import jax
import jax.numpy as jnp
from jax.experimental import pallas as pl
from jax.experimental.pallas import tpu as pltpu


def _round_up(x, m):
    return ((x + m - 1) // m) * m


# ----------------------------------------------------------------------------
# Fused linear kernel:  y = act(LN?(x) @ w + b) (+ residual)
# with optional per-block channel sum / sum-of-squares (BatchNorm statistics).
# ----------------------------------------------------------------------------

def _linear_kernel(*refs, act, ln, has_res, stats, total_rows):
    it = iter(refs)
    x_ref = next(it)
    if ln:
        g_ref = next(it)
        bln_ref = next(it)
    w_ref = next(it)
    b_ref = next(it)
    if has_res:
        r_ref = next(it)
    o_ref = next(it)
    if stats:
        s_ref = next(it)
        q_ref = next(it)

    x = x_ref[...].astype(jnp.float32)
    if ln:
        mu = jnp.mean(x, axis=-1, keepdims=True)
        xc = x - mu
        var = jnp.mean(xc * xc, axis=-1, keepdims=True)
        x = xc * jax.lax.rsqrt(var + 1e-5) * g_ref[...] + bln_ref[...]

    y = jnp.dot(x.astype(jnp.bfloat16), w_ref[...].astype(jnp.bfloat16),
                preferred_element_type=jnp.float32)
    y = y + b_ref[...]
    if act == "gelu":          # exact GELU, f32 (matches torch.nn.GELU)
        y = 0.5 * y * (1.0 + jax.lax.erf(y * (1.0 / math.sqrt(2.0))))
    elif act == "relu":
        y = jnp.maximum(y, 0.0)
    if has_res:
        y = y + r_ref[...].astype(jnp.float32)
    o_ref[...] = y.astype(o_ref.dtype)

    if stats:
        tm = x_ref.shape[0]
        n_out = y.shape[1]
        rid = pl.program_id(0) * tm + jax.lax.broadcasted_iota(
            jnp.int32, (tm, 1), 0)
        ym = jnp.where(rid < total_rows, y, 0.0)   # mask ragged tail rows
        s = jnp.sum(ym, axis=0, keepdims=True)
        q = jnp.sum(ym * ym, axis=0, keepdims=True)
        s_ref[...] = jnp.broadcast_to(s, (8, n_out))
        q_ref[...] = jnp.broadcast_to(q, (8, n_out))


def linear(x, w, b, *, act="none", ln=None, residual=None, stats=False, tm=512):
    """y = act(LN?(x) @ w + b) (+ residual).  x:(M,K), w:(K,N), b:(N,)."""
    M, K = x.shape
    N = w.shape[1]
    tm = min(tm, M)
    grid = pl.cdiv(M, tm)

    in_specs = [pl.BlockSpec((tm, K), lambda i: (i, 0))]
    args = [x]
    if ln is not None:
        gamma, beta = ln
        in_specs += [pl.BlockSpec((1, K), lambda i: (0, 0)),
                     pl.BlockSpec((1, K), lambda i: (0, 0))]
        args += [gamma.reshape(1, K), beta.reshape(1, K)]
    in_specs += [pl.BlockSpec((K, N), lambda i: (0, 0)),
                 pl.BlockSpec((1, N), lambda i: (0, 0))]
    # TODO(synk): add K-tiling (grid axis + VMEM accumulator) for very large K
    # on v7x; at these dims the resident (K, N) weight easily fits VMEM.
    args += [w, b.reshape(1, N)]
    if residual is not None:
        in_specs.append(pl.BlockSpec((tm, N), lambda i: (i, 0)))
        args.append(residual)

    out_specs = pl.BlockSpec((tm, N), lambda i: (i, 0))
    out_shape = jax.ShapeDtypeStruct((M, N), jnp.float32)
    if stats:
        out_specs = [out_specs,
                     pl.BlockSpec((8, N), lambda i: (i, 0)),
                     pl.BlockSpec((8, N), lambda i: (i, 0))]
        out_shape = [out_shape,
                     jax.ShapeDtypeStruct((grid * 8, N), jnp.float32),
                     jax.ShapeDtypeStruct((grid * 8, N), jnp.float32)]

    kern = functools.partial(_linear_kernel, act=act, ln=ln is not None,
                             has_res=residual is not None, stats=stats,
                             total_rows=M)
    out = pl.pallas_call(
        kern, grid=(grid,), in_specs=in_specs, out_specs=out_specs,
        out_shape=out_shape,
        compiler_params=pltpu.CompilerParams(dimension_semantics=("parallel",)),
    )(*args)
    if not stats:
        return out
    y, ps, pq = out
    s = ps[0::8].sum(axis=0)
    sq = pq[0::8].sum(axis=0)
    mean = s / M
    var = sq / M - mean * mean     # biased (training-mode) variance
    return y, mean, var


# ----------------------------------------------------------------------------
# BN scale/shift + ReLU (+ residual) with lane-dense packing for small C.
# ----------------------------------------------------------------------------

def _scale_shift_relu_kernel(*refs, has_res):
    if has_res:
        x_ref, a_ref, c_ref, r_ref, o_ref = refs
    else:
        x_ref, a_ref, c_ref, o_ref = refs
    y = jnp.maximum(x_ref[...] * a_ref[...] + c_ref[...], 0.0)
    if has_res:
        y = y + r_ref[...]
    o_ref[...] = y.astype(o_ref.dtype)


def scale_shift_relu(x, scale, shift, residual=None, tm=2048):
    M, C = x.shape
    pack = 8 if (C < 128 and M % 8 == 0) else 1   # lane-dense repack
    rows, lanes = M // pack, pack * C
    xw = x.reshape(rows, lanes)
    aw = jnp.tile(scale.reshape(1, C), (1, pack))
    cw = jnp.tile(shift.reshape(1, C), (1, pack))
    tmr = min(tm, rows)
    args = [xw, aw, cw]
    in_specs = [pl.BlockSpec((tmr, lanes), lambda i: (i, 0)),
                pl.BlockSpec((1, lanes), lambda i: (0, 0)),
                pl.BlockSpec((1, lanes), lambda i: (0, 0))]
    if residual is not None:
        args.append(residual.reshape(rows, lanes))
        in_specs.append(pl.BlockSpec((tmr, lanes), lambda i: (i, 0)))
    out = pl.pallas_call(
        functools.partial(_scale_shift_relu_kernel,
                          has_res=residual is not None),
        grid=(pl.cdiv(rows, tmr),), in_specs=in_specs,
        out_specs=pl.BlockSpec((tmr, lanes), lambda i: (i, 0)),
        out_shape=jax.ShapeDtypeStruct((rows, lanes), jnp.float32),
        compiler_params=pltpu.CompilerParams(dimension_semantics=("parallel",)),
    )(*args)
    return out.reshape(M, C)


# ----------------------------------------------------------------------------
# 3x3x3 'same' conv via 27-tap accumulation on the flattened padded volume,
# with fused BatchNorm batch statistics.
# ----------------------------------------------------------------------------

def _conv3x3_kernel(x_ref, w_ref, b_ref, m_ref, y_ref, s_ref, q_ref, *,
                    offsets, chunk_rows):
    co = y_ref.shape[-1]
    base = pl.program_id(1) * chunk_rows
    y_ref[...] = jnp.broadcast_to(b_ref[...], (chunk_rows, co))
    for t, off in enumerate(offsets):
        tap = x_ref[pl.ds(base + off, chunk_rows), :].astype(jnp.bfloat16)
        wt = w_ref[t].astype(jnp.bfloat16)
        y_ref[...] += jnp.dot(tap, wt, preferred_element_type=jnp.float32)
    y = y_ref[...]
    ym = y * m_ref[...]                  # zero padded / dummy rows for stats
    s_ref[...] = jnp.broadcast_to(jnp.sum(ym, axis=0, keepdims=True), (8, co))
    q_ref[...] = jnp.broadcast_to(jnp.sum(ym * ym, axis=0, keepdims=True),
                                  (8, co))


def _pick_chunk(n_rows, target=256):
    best = n_rows
    for c in range(8, min(target, n_rows) + 1, 8):
        if n_rows % c == 0:
            best = c
    return best


def conv3x3_bn_stats(x_cl, w, b):
    """x_cl:(B,D,H,W,Ci), w:(27,Ci,Co) in (kd,kh,kw) order, b:(Co,).
    Returns y:(B*D*H*W, Co), per-channel mean and (biased) variance."""
    B, D, H, W, Ci = x_cl.shape
    Co = w.shape[-1]
    Hp, Wp = H + 2, W + 2
    P2 = Hp * Wp
    n_valid = D * P2                        # rows holding every valid output
    n_rows = _round_up(n_valid, 8)
    max_off = 2 * P2 + 2 * Wp + 2
    # Extra trailing D padding so every tap window stays inside the per-batch
    # block and the per-batch row count is 8-aligned.
    e = 1
    while ((D + 2 + e) * P2) % 8 != 0 or (D + 2 + e) * P2 < n_rows + max_off:
        e += 1
        assert e < 64
    P3 = (D + 2 + e) * P2
    # TODO(synk): for very large volumes one batch's padded rows may exceed
    # VMEM; a D-halo blocking (manual DMA) variant would be needed there.

    xp = jnp.pad(x_cl, ((0, 0), (1, 1 + e), (1, 1), (1, 1), (0, 0)))
    xf = xp.reshape(B * P3, Ci)

    offsets = tuple(kd * P2 + kh * Wp + kw
                    for kd in range(3) for kh in range(3) for kw in range(3))
    rr = np.arange(n_rows)
    valid = ((rr < n_valid) & ((rr % P2) // Wp < H) & (rr % Wp < W))
    vm = jnp.asarray(valid.astype(np.float32).reshape(n_rows, 1))

    cr = _pick_chunk(n_rows)
    n_chunks = n_rows // cr
    kern = functools.partial(_conv3x3_kernel, offsets=offsets, chunk_rows=cr)
    y, ps, pq = pl.pallas_call(
        kern, grid=(B, n_chunks),
        in_specs=[pl.BlockSpec((P3, Ci), lambda bb, j: (bb, 0)),
                  pl.BlockSpec((27, Ci, Co), lambda bb, j: (0, 0, 0)),
                  pl.BlockSpec((1, Co), lambda bb, j: (0, 0)),
                  pl.BlockSpec((cr, 1), lambda bb, j: (j, 0))],
        out_specs=[pl.BlockSpec((cr, Co), lambda bb, j: (bb * n_chunks + j, 0)),
                   pl.BlockSpec((8, Co), lambda bb, j: (bb * n_chunks + j, 0)),
                   pl.BlockSpec((8, Co), lambda bb, j: (bb * n_chunks + j, 0))],
        out_shape=[jax.ShapeDtypeStruct((B * n_rows, Co), jnp.float32),
                   jax.ShapeDtypeStruct((B * n_chunks * 8, Co), jnp.float32),
                   jax.ShapeDtypeStruct((B * n_chunks * 8, Co), jnp.float32)],
        compiler_params=pltpu.CompilerParams(
            dimension_semantics=("parallel", "arbitrary")),
    )(xf, w, b.reshape(1, Co), vm)

    y = y.reshape(B, n_rows, Co)[:, :n_valid, :]
    y = y.reshape(B, D, Hp, Wp, Co)[:, :, :H, :W, :].reshape(-1, Co)
    M = B * D * H * W
    mean = ps[0::8].sum(axis=0) / M
    var = pq[0::8].sum(axis=0) / M - mean * mean
    return y, mean, var


# ----------------------------------------------------------------------------
# Residual conv block (Conv -> BN(train stats) -> ReLU, residual adds fused)
# ----------------------------------------------------------------------------

def _bn_affine(mean, var, gamma, beta, eps=1e-5):
    inv = jax.lax.rsqrt(var + eps)
    scale = gamma * inv
    shift = beta - mean * scale
    return scale, shift


def residual_block_apply(x_cl, p):
    B, D, H, W, Ci = x_cl.shape
    x_flat = x_cl.reshape(-1, Ci)
    # 1x1 conv branch (BN stats fused into the matmul epilogue)
    y, mean, var = linear(x_flat, p["conv_res"]["w"], p["conv_res"]["b"],
                          stats=True)
    scale, shift = _bn_affine(mean, var, p["conv_res"]["gamma"],
                              p["conv_res"]["beta"])
    x_res = scale_shift_relu(y, scale, shift)
    # 3x3 conv branch; residual add fused into the BN/ReLU pass
    y, mean, var = conv3x3_bn_stats(x_cl, p["conv"]["w"], p["conv"]["b"])
    scale, shift = _bn_affine(mean, var, p["conv"]["gamma"], p["conv"]["beta"])
    x_out = scale_shift_relu(y, scale, shift, residual=x_res)
    Co = x_out.shape[-1]
    for rp in p["remain"]:
        y, mean, var = conv3x3_bn_stats(x_out.reshape(B, D, H, W, Co),
                                        rp["w"], rp["b"])
        scale, shift = _bn_affine(mean, var, rp["gamma"], rp["beta"])
        x_out = scale_shift_relu(y, scale, shift, residual=x_out)
    return x_out.reshape(B, D, H, W, Co)


# ----------------------------------------------------------------------------
# Windowed cross-attention core (relative bias + shift mask added in-kernel)
# ----------------------------------------------------------------------------

def _mca_attn_kernel(*refs, num_heads, head_dim, scale, has_mask):
    if has_mask:
        q_ref, kv_ref, bias_ref, mask_ref, o_ref = refs
    else:
        q_ref, kv_ref, bias_ref, o_ref = refs
    C = num_heads * head_dim
    qv = q_ref[...]
    kvv = kv_ref[...]
    bias = bias_ref[...]
    mask = mask_ref[...] if has_mask else None
    for h in range(num_heads):
        lo, hi = h * head_dim, (h + 1) * head_dim
        qh = qv[:, :, lo:hi] * scale
        kh = kvv[:, :, lo:hi]
        vh = kvv[:, :, C + lo:C + hi]
        s = jnp.einsum("bqd,bkd->bqk", qh, kh,
                       preferred_element_type=jnp.float32)
        s = s + bias[h][None, :, :]
        if has_mask:
            s = s + mask
        s = s - jnp.max(s, axis=-1, keepdims=True)
        pexp = jnp.exp(s)
        pexp = pexp / jnp.sum(pexp, axis=-1, keepdims=True)
        o = jnp.einsum("bqk,bkd->bqd", pexp, vh,
                       preferred_element_type=jnp.float32)
        o_ref[:, :, lo:hi] = o.astype(o_ref.dtype)


def _pick_window_tile(nw, n, C, budget=4 * 1024 * 1024):
    per_w = 8 * (4 * n * C + n * n)     # f32 bytes, double-buffered
    best = 1
    for d in range(1, nw + 1):
        if nw % d == 0 and d * per_w <= budget:
            best = d
    return best


def mca_attention(q, kv, rel_bias, mask, num_heads, nw):
    """q:(BW,n,C), kv:(BW,n,2C), rel_bias:(heads,n,n), mask:(nw,n,n) or None."""
    BW, n, C = q.shape
    head_dim = C // num_heads
    scale = head_dim ** (-0.5)
    tbw = _pick_window_tile(nw, n, C)
    grid = BW // tbw
    in_specs = [pl.BlockSpec((tbw, n, C), lambda i: (i, 0, 0)),
                pl.BlockSpec((tbw, n, 2 * C), lambda i: (i, 0, 0)),
                pl.BlockSpec((num_heads, n, n), lambda i: (0, 0, 0))]
    args = [q, kv, rel_bias]
    if mask is not None:
        nblk = nw // tbw
        in_specs.append(pl.BlockSpec((tbw, n, n), lambda i: (i % nblk, 0, 0)))
        args.append(mask)
    kern = functools.partial(_mca_attn_kernel, num_heads=num_heads,
                             head_dim=head_dim, scale=scale,
                             has_mask=mask is not None)
    return pl.pallas_call(
        kern, grid=(grid,), in_specs=in_specs,
        out_specs=pl.BlockSpec((tbw, n, C), lambda i: (i, 0, 0)),
        out_shape=jax.ShapeDtypeStruct((BW, n, C), jnp.float32),
        compiler_params=pltpu.CompilerParams(dimension_semantics=("parallel",)),
    )(*args)


# ----------------------------------------------------------------------------
# Swin-style windowing helpers (host / XLA glue)
# ----------------------------------------------------------------------------

def get_window_size(x_size, window_size, shift_size=None):
    ws = list(window_size)
    ss = list(shift_size) if shift_size is not None else None
    for i in range(len(x_size)):
        if x_size[i] <= window_size[i]:
            ws[i] = x_size[i]
            if ss is not None:
                ss[i] = 0
    if shift_size is None:
        return tuple(ws)
    return tuple(ws), tuple(ss)


def window_partition(x, ws):
    B, D, H, W, C = x.shape
    x = x.reshape(B, D // ws[0], ws[0], H // ws[1], ws[1], W // ws[2], ws[2], C)
    x = jnp.transpose(x, (0, 1, 3, 5, 2, 4, 6, 7))
    return x.reshape(-1, ws[0] * ws[1] * ws[2], C)


def window_reverse(windows, ws, dims):
    B, D, H, W = dims
    x = windows.reshape(B, D // ws[0], H // ws[1], W // ws[2],
                        ws[0], ws[1], ws[2], -1)
    x = jnp.transpose(x, (0, 1, 4, 2, 5, 3, 6, 7))
    return x.reshape(B, D, H, W, -1)


def compute_mask_np(dims, ws, ss):
    d, h, w = dims
    img_mask = np.zeros((1, d, h, w, 1), dtype=np.float32)
    cnt = 0
    for dsl in (slice(None, -ws[0]), slice(-ws[0], -ss[0]), slice(-ss[0], None)):
        for hsl in (slice(None, -ws[1]), slice(-ws[1], -ss[1]), slice(-ss[1], None)):
            for wsl in (slice(None, -ws[2]), slice(-ws[2], -ss[2]), slice(-ss[2], None)):
                img_mask[:, dsl, hsl, wsl, :] = cnt
                cnt += 1
    mw = img_mask.reshape(1, d // ws[0], ws[0], h // ws[1], ws[1],
                          w // ws[2], ws[2], 1)
    mw = mw.transpose(0, 1, 3, 5, 2, 4, 6, 7).reshape(-1, ws[0] * ws[1] * ws[2])
    attn_mask = mw[:, None, :] - mw[:, :, None]
    attn_mask = np.where(attn_mask != 0, -100.0, 0.0).astype(np.float32)
    return jnp.asarray(attn_mask)


def relative_position_index_np(ws):
    coords = np.stack(np.meshgrid(np.arange(ws[0]), np.arange(ws[1]),
                                  np.arange(ws[2]), indexing="ij"))
    cf = coords.reshape(3, -1)
    rel = cf[:, :, None] - cf[:, None, :]
    rel = rel.transpose(1, 2, 0).astype(np.int64)
    rel[:, :, 0] += ws[0] - 1
    rel[:, :, 1] += ws[1] - 1
    rel[:, :, 2] += ws[2] - 1
    rel[:, :, 0] *= (2 * ws[1] - 1) * (2 * ws[2] - 1)
    rel[:, :, 1] *= 2 * ws[2] - 1
    return rel.sum(-1)


# ----------------------------------------------------------------------------
# Swin cross-attention stage
# ----------------------------------------------------------------------------

def swin_block_apply(x, x_cross, mask_matrix, p, window_size, shift_size,
                     num_heads, rel_index):
    B, D, H, W, C = x.shape
    ws, ss = get_window_size((D, H, W), window_size, shift_size)
    pad_d1 = (ws[0] - D % ws[0]) % ws[0]
    pad_b = (ws[1] - H % ws[1]) % ws[1]
    pad_r = (ws[2] - W % ws[2]) % ws[2]
    pads = ((0, 0), (0, pad_d1), (0, pad_b), (0, pad_r), (0, 0))
    xs = jnp.pad(x, pads) if (pad_d1 or pad_b or pad_r) else x
    xc = jnp.pad(x_cross, pads) if (pad_d1 or pad_b or pad_r) else x_cross
    _, Dp, Hp, Wp, _ = xs.shape
    if any(s > 0 for s in ss):
        xs = jnp.roll(xs, shift=(-ss[0], -ss[1], -ss[2]), axis=(1, 2, 3))
        xc = jnp.roll(xc, shift=(-ss[0], -ss[1], -ss[2]), axis=(1, 2, 3))
        attn_mask = mask_matrix
    else:
        attn_mask = None
    # window the RAW x; norm1 is fused into the q projection (LN is pointwise,
    # and padded query rows only feed positions that are cropped away below).
    x_win = window_partition(xs, ws)
    xc_win = window_partition(xc, ws)
    BW, n, _ = x_win.shape
    nw = (Dp // ws[0]) * (Hp // ws[1]) * (Wp // ws[2])

    rel_bias = p["attn"]["rel_table"][rel_index[:n, :n].reshape(-1)]
    rel_bias = rel_bias.reshape(n, n, num_heads).transpose(2, 0, 1)

    q = linear(x_win.reshape(-1, C), p["attn"]["wq"], p["attn"]["bq"],
               ln=(p["norm1_g"], p["norm1_b"])).reshape(BW, n, C)
    kv = linear(xc_win.reshape(-1, C), p["attn"]["wkv"],
                p["attn"]["bkv"]).reshape(BW, n, 2 * C)
    o = mca_attention(q, kv, rel_bias, attn_mask, num_heads, nw)
    attn = linear(o.reshape(-1, C), p["attn"]["wproj"],
                  p["attn"]["bproj"]).reshape(BW, n, C)

    attn = attn.reshape(-1, ws[0], ws[1], ws[2], C)
    shifted = window_reverse(attn, ws, (B, Dp, Hp, Wp))
    if any(s > 0 for s in ss):
        shifted = jnp.roll(shifted, shift=(ss[0], ss[1], ss[2]), axis=(1, 2, 3))
    x = x + shifted[:, :D, :H, :W, :]

    # MLP: norm2 fused into linear1, residual add fused into linear2.
    x_flat = x.reshape(-1, C)
    h = linear(x_flat, p["mlp_w1"], p["mlp_b1"], act="gelu",
               ln=(p["norm2_g"], p["norm2_b"]))
    out = linear(h, p["mlp_w2"], p["mlp_b2"], residual=x_flat)
    return out.reshape(B, D, H, W, C)


def swin_stage_apply(x, x_cross, p, window_size, num_heads):
    B, D, H, W, C = x.shape
    shift_size = tuple(i // 2 for i in window_size)
    no_shift = tuple(0 for _ in window_size)
    ws, ss = get_window_size((D, H, W), window_size, shift_size)
    dp = int(np.ceil(D / ws[0])) * ws[0]
    hp = int(np.ceil(H / ws[1])) * ws[1]
    wp = int(np.ceil(W / ws[2])) * ws[2]
    attn_mask = compute_mask_np((dp, hp, wp), ws, ss)
    rel_index = relative_position_index_np(window_size)
    for i, bp in enumerate(p["blocks"]):
        blk_shift = no_shift if i % 2 == 0 else shift_size
        x = swin_block_apply(x, x_cross, attn_mask, bp, window_size, blk_shift,
                             num_heads, rel_index)
    return x


# ----------------------------------------------------------------------------
# Cross_Hybrid_block
# ----------------------------------------------------------------------------

def cross_hybrid_forward(params, x1_nc, x2_nc, *, num_heads, window_size):
    x1 = jnp.transpose(x1_nc, (0, 2, 3, 4, 1)).astype(jnp.float32)
    x2 = jnp.transpose(x2_nc, (0, 2, 3, 4, 1)).astype(jnp.float32)
    B, D, H, W, Cin = x1.shape
    x_conv = residual_block_apply(x1, params["res"])
    E = x_conv.shape[-1]
    x1p = linear(x1.reshape(-1, Cin), params["proj1_w"],
                 params["proj1_b"]).reshape(B, D, H, W, E)
    x2p = linear(x2.reshape(-1, Cin), params["proj2_w"],
                 params["proj2_b"]).reshape(B, D, H, W, E)
    x_trans = swin_stage_apply(x1p, x2p, params["stage"], window_size,
                               num_heads)
    out = x_conv + x_trans
    return jnp.transpose(out, (0, 4, 1, 2, 3))


def init_params(key, in_channels, embed_dim, conv_num, num_layers, num_heads,
                window_size, mlp_ratio=4.0):
    keys = iter(jax.random.split(key, 256))

    def nk():
        return next(keys)

    def lin(fan_in, fan_out):
        w = jax.random.normal(nk(), (fan_in, fan_out), jnp.float32) * 0.02
        b = jax.random.normal(nk(), (fan_out,), jnp.float32) * 0.02
        return w, b

    def conv_block(ci, co, k):
        if k == 1:
            w = jax.random.normal(nk(), (ci, co), jnp.float32) * 0.02
        else:  # (27, Ci, Co) in (kd, kh, kw) tap order
            w = jax.random.normal(nk(), (27, ci, co), jnp.float32) * 0.02
        b = jax.random.normal(nk(), (co,), jnp.float32) * 0.02
        return {"k": k, "w": w, "b": b,
                "gamma": jnp.ones((co,), jnp.float32),
                "beta": jnp.zeros((co,), jnp.float32)}

    res = {"conv_res": conv_block(in_channels, embed_dim, 1),
           "conv": conv_block(in_channels, embed_dim, 3),
           "remain": [conv_block(embed_dim, embed_dim, 3)
                      for _ in range(conv_num - 1)]}

    proj1_w, proj1_b = lin(in_channels, embed_dim)
    proj2_w, proj2_b = lin(in_channels, embed_dim)

    n_rel = ((2 * window_size[0] - 1) * (2 * window_size[1] - 1)
             * (2 * window_size[2] - 1))
    mlp_dim = int(embed_dim * mlp_ratio)
    blocks = []
    for _ in range(num_layers):
        wq, bq = lin(embed_dim, embed_dim)
        wkv, bkv = lin(embed_dim, 2 * embed_dim)
        wp_, bp_ = lin(embed_dim, embed_dim)
        w1, b1 = lin(embed_dim, mlp_dim)
        w2, b2 = lin(mlp_dim, embed_dim)
        blocks.append({
            "norm1_g": jnp.ones((embed_dim,), jnp.float32),
            "norm1_b": jnp.zeros((embed_dim,), jnp.float32),
            "attn": {
                "rel_table": jax.random.normal(nk(), (n_rel, num_heads),
                                               jnp.float32) * 0.02,
                "wq": wq, "bq": bq, "wkv": wkv, "bkv": bkv,
                "wproj": wp_, "bproj": bp_,
            },
            "norm2_g": jnp.ones((embed_dim,), jnp.float32),
            "norm2_b": jnp.zeros((embed_dim,), jnp.float32),
            "mlp_w1": w1, "mlp_b1": b1, "mlp_w2": w2, "mlp_b2": b2,
        })

    return {"res": res, "proj1_w": proj1_w, "proj1_b": proj1_b,
            "proj2_w": proj2_w, "proj2_b": proj2_b,
            "stage": {"blocks": blocks}}


if __name__ == "__main__":
    in_channels, embed_dim = 4, 16
    conv_num, num_layers, num_heads = 2, 2, 2
    window_size = (2, 2, 2)
    B, D, H, W = 2, 8, 8, 8

    key = jax.random.PRNGKey(0)
    kp, k1, k2 = jax.random.split(key, 3)
    params = init_params(kp, in_channels, embed_dim, conv_num, num_layers,
                         num_heads, window_size)
    x1 = jax.random.normal(k1, (B, in_channels, D, H, W), jnp.float32)
    x2 = jax.random.normal(k2, (B, in_channels, D, H, W), jnp.float32)

    out = cross_hybrid_forward(params, x1, x2, num_heads=num_heads,
                               window_size=window_size)
    out = jax.block_until_ready(out)
    assert out.shape == (B, embed_dim, D, H, W), out.shape
    assert bool(jnp.all(jnp.isfinite(out)))
    print("KERNEL_OK")
</pallas_src>

<mosaic_0001>
module attributes {stable_mosaic.version = 11 : i64} {
  func.func @_linear_kernel(%arg0: i32, %arg1: memref<512x4xf32, #tpu.memory_space<vmem>>, %arg2: memref<4x16xf32, #tpu.memory_space<vmem>>, %arg3: memref<1x16xf32, #tpu.memory_space<vmem>>, %arg4: memref<512x16xf32, #tpu.memory_space<vmem>>, %arg5: memref<8x16xf32, #tpu.memory_space<vmem>>, %arg6: memref<8x16xf32, #tpu.memory_space<vmem>>) attributes {dimension_semantics = [#tpu.dimension_semantics<parallel>], iteration_bounds = array<i64: 2>, scalar_prefetch = 0 : i64, scratch_operands = 0 : i64, tpu.core_type = #tpu.core_type<tc>, window_params = [{transform_indices = @transform_0, window_bounds = array<i64: 512, 4>}, {pipeline_mode = #tpu.pipeline_mode<synchronous>, transform_indices = @transform_1, window_bounds = array<i64: 4, 16>}, {pipeline_mode = #tpu.pipeline_mode<synchronous>, transform_indices = @transform_2, window_bounds = array<i64: 1, 16>}, {transform_indices = @transform_3, window_bounds = array<i64: 512, 16>}, {transform_indices = @transform_4, window_bounds = array<i64: 8, 16>}, {transform_indices = @transform_5, window_bounds = array<i64: 8, 16>}]} {
    %c0 = arith.constant 0 : index
    %c0_0 = arith.constant 0 : index
    %0 = vector.load %arg1[%c0, %c0_0] : memref<512x4xf32, #tpu.memory_space<vmem>>, vector<512x4xf32>
    %1 = arith.truncf %0 : vector<512x4xf32> to vector<512x4xbf16>
    %c0_1 = arith.constant 0 : index
    %c0_2 = arith.constant 0 : index
    %2 = vector.load %arg2[%c0_1, %c0_2] : memref<4x16xf32, #tpu.memory_space<vmem>>, vector<4x16xf32>
    %3 = arith.truncf %2 : vector<4x16xf32> to vector<4x16xbf16>
    %cst = arith.constant dense<0.000000e+00> : vector<512x16xf32>
    %4 = tpu.matmul %1, %3, %cst {dimension_numbers = #tpu.dot_dimension_numbers<[1], [0], [0], [1], [0, 0, 1, 1], [], []>} : vector<512x4xbf16>, vector<4x16xbf16>, vector<512x16xf32> -> vector<512x16xf32>
    %c0_3 = arith.constant 0 : index
    %c0_4 = arith.constant 0 : index
    %5 = vector.load %arg3[%c0_3, %c0_4] : memref<1x16xf32, #tpu.memory_space<vmem>>, vector<1x16xf32>
    %6 = vector.broadcast %5 : vector<1x16xf32> to vector<512x16xf32>
    %7 = arith.addf %4, %6 : vector<512x16xf32>
    %c0_5 = arith.constant 0 : index
    %c0_6 = arith.constant 0 : index
    %8 = vector.load %arg4[%c0_5, %c0_6] : memref<512x16xf32, #tpu.memory_space<vmem>>, vector<512x16xf32>
    tpu.vector_store %arg4[%c0_5, %c0_6], %7 {strides = array<i32>} : memref<512x16xf32, #tpu.memory_space<vmem>>, vector<512x16xf32>,
    %c512_i32 = arith.constant 512 : i32
    %9 = arith.muli %arg0, %c512_i32 : i32
    %10 = tpu.iota {dimensions = array<i32: 0>} : vector<512x1xi32>
    %11 = vector.broadcast %9 : i32 to vector<512x1xi32>
    %12 = arith.addi %11, %10 : vector<512x1xi32>
    %c1024_i32 = arith.constant 1024 : i32
    %13 = vector.broadcast %c1024_i32 : i32 to vector<512x1xi32>
    %14 = arith.cmpi slt, %12, %13 : vector<512x1xi32>
    %cst_7 = arith.constant 0.000000e+00 : f32
    %15 = vector.shape_cast %14 : vector<512x1xi1> to vector<512x1xi1>
    %16 = vector.broadcast %15 : vector<512x1xi1> to vector<512x16xi1>
    %17 = vector.broadcast %cst_7 : f32 to vector<512x16xf32>
    %18 = arith.select %16, %7, %17 : vector<512x16xi1>, vector<512x16xf32>
    %cst_8 = arith.constant dense<0.000000e+00> : vector<16xf32>
    %19 = vector.multi_reduction <add>, %18, %cst_8 [0] : vector<512x16xf32> to vector<16xf32>
    %20 = vector.shape_cast %19 : vector<16xf32> to vector<1x16xf32>
    %21 = arith.mulf %18, %18 : vector<512x16xf32>
    %cst_9 = arith.constant dense<0.000000e+00> : vector<16xf32>
    %22 = vector.multi_reduction <add>, %21, %cst_9 [0] : vector<512x16xf32> to vector<16xf32>
    %23 = vector.shape_cast %22 : vector<16xf32> to vector<1x16xf32>
    %24 = vector.shape_cast %20 : vector<1x16xf32> to vector<1x16xf32>
    %25 = vector.broadcast %24 : vector<1x16xf32> to vector<8x16xf32>
    %c0_10 = arith.constant 0 : index
    %c0_11 = arith.constant 0 : index
    %26 = vector.load %arg5[%c0_10, %c0_11] : memref<8x16xf32, #tpu.memory_space<vmem>>, vector<8x16xf32>
    tpu.vector_store %arg5[%c0_10, %c0_11], %25 {strides = array<i32>} : memref<8x16xf32, #tpu.memory_space<vmem>>, vector<8x16xf32>,
    %27 = vector.shape_cast %23 : vector<1x16xf32> to vector<1x16xf32>
    %28 = vector.broadcast %27 : vector<1x16xf32> to vector<8x16xf32>
    %c0_12 = arith.constant 0 : index
    %c0_13 = arith.constant 0 : index
    %29 = vector.load %arg6[%c0_12, %c0_13] : memref<8x16xf32, #tpu.memory_space<vmem>>, vector<8x16xf32>
    tpu.vector_store %arg6[%c0_12, %c0_13], %28 {strides = array<i32>} : memref<8x16xf32, #tpu.memory_space<vmem>>, vector<8x16xf32>,
    return
  }
  func.func @transform_0(%arg0: i32) -> (i32, i32) {
    %c0_i32 = arith.constant 0 : i32
    %c0_i32_0 = arith.constant 0 : i32
    return %arg0, %c0_i32 : i32, i32
  }
  func.func @transform_1(%arg0: i32) -> (i32, i32) {
    %c0_i32 = arith.constant 0 : i32
    %c0_i32_0 = arith.constant 0 : i32
    %c0_i32_1 = arith.constant 0 : i32
    return %c0_i32, %c0_i32_0 : i32, i32
  }
  func.func @transform_2(%arg0: i32) -> (i32, i32) {
    %c0_i32 = arith.constant 0 : i32
    %c0_i32_0 = arith.constant 0 : i32
    %c0_i32_1 = arith.constant 0 : i32
    return %c0_i32, %c0_i32_0 : i32, i32
  }
  func.func @transform_3(%arg0: i32) -> (i32, i32) {
    %c0_i32 = arith.constant 0 : i32
    %c0_i32_0 = arith.constant 0 : i32
    return %arg0, %c0_i32 : i32, i32
  }
  func.func @transform_4(%arg0: i32) -> (i32, i32) {
    %c0_i32 = arith.constant 0 : i32
    %c0_i32_0 = arith.constant 0 : i32
    return %arg0, %c0_i32 : i32, i32
  }
  func.func @transform_5(%arg0: i32) -> (i32, i32) {
    %c0_i32 = arith.constant 0 : i32
    %c0_i32_0 = arith.constant 0 : i32
    return %arg0, %c0_i32 : i32, i32
  }
}

</mosaic_0001>

<bundles_post_ra>
// kernel: tpu_custom_call.1
= control target key start
LH: loop header
LB: loop body
LE: loop exit
PB: predicated region body
PF: predicated region fallthrough
CT: control target
= control target key end

     0   :  { %11 = vsyncpa [#allocation3], 0  ;;  %s3239_s0 = inlined_call_operand.vmem [shape: f32[1024,4], index: 0, kind: input, shape index: {}]   ;;  %s3240_s1 = inlined_call_operand.vmem [shape: f32[4,16], index: 1, kind: input, shape index: {}]   ;;  %s3241_s2 = inlined_call_operand.vmem [shape: f32[1,16], index: 2, kind: input, shape index: {}]   ;;  %s3242_s3 = inlined_call_operand.vmem [shape: f32[1024,16], index: 3, kind: output, shape index: {0}]   ;;  %s3243_s4 = inlined_call_operand.hbm [shape: f32[16,16], index: 4, kind: output, shape index: {1}]   ;;  %s3244_s5 = inlined_call_operand.hbm [shape: f32[16,16], index: 5, kind: output, shape index: {2}]  }
   0x1   :  { %13 = vsyncpa [#allocation3 + $0x1], 0 }
   0x2   :  { %14 = vsyncpa [#allocation5], 0 }
   0x3   :  { %16 = vsyncpa [#allocation5 + $0x1], 0  ;;  %s2012_s18 = smov 0   ;;  %s2014_s19 = smov 0  }
   0x4   :  { %s2016_s20 = smov 0   ;;  %s2018_s21 = smov 0  }
   0x5 LB: > { %s2033_s22 = sadd.s32 4294967295, %s1978_s21   ;;  %s1686_s23 = sadd.s32 4294967294, %s1978_s21   ;;  %s1978_s21 = sphi %s2018_s21, %s3272_s21   ;;  %s1974_s20 = sphi %s2016_s20, %s3271_s20   ;;  %s1970_s19 = sphi %s2014_s19, %s3270_s19   ;;  %s1966_s18 = sphi %s2012_s18, %s3269_s18  }
   0x6   : > { %s2037_s24 = sadd.s32 1, %s1978_s21   ;;  %s123_s25 = sadd.s32 1, %s1974_s20 }
   0x7   : > { %s120_s26 = ssub.s32 %s1978_s21, %s2037_s24  ;;  %p133_p0 = scmp.ne.s32.totalorder %s1974_s20, %s1970_s19 }
   0x8   : > { %p121_p1 = scmp.eq.s32.totalorder %s120_s26, 0  ;;  %p134_p2 = scmp.eq.s32.totalorder %s2033_s22, 1 }
   0x9   : > { %p139_p3 = scmp.ne.s32.totalorder %s1970_s19, %s1966_s18  ;;  %p140_p4 = scmp.eq.s32.totalorder %s1686_s23, 1 }
   0xa   : > { %s2048_s27 = scalar_select %p121_p1, %s1974_s20, %s123_s25  }
   0xb   : > { %p2050_p5 = por %p134_p2, %p133_p0  ;;  %p2054_p6 = por %p140_p4, %p139_p3 }
   0xc   : > { %p1689_p7 = scmp.ge.s32.totalorder %s1978_s21, 1  ;;  %p199_p8 = scmp.lt.s32.totalorder %s1978_s21, 3 }
   0xe   : > { %p200_p9 = pnand %p1689_p7, %p199_p8 }
  0x10   : > { %203 = sbr.rel (%p200_p9) target bundleno = 437 (0x1b5), region = 32 }
  0x17   : > { %v346_v0 = vld [vmem:[%s3240_s1] sm:$0xf]  ;;  %vm452_vm0 = vcmask 1041408   ;;  %s1692_s7 = sshll.u32 %s2033_s22, 6  ;;  %vm355_vm1 = vcmask 31744   ;;  %s1729_s12 = sshll.u32 %s2033_s22, 9 }
  0x18   : > { %v347_v1 = vpack.c.bf16 %v346_v0, %v346_v0  ;;  %p238_p10 = scmp.lt.s32.totalorder %s1692_s7, 127  ;;  %vm745_vm2 = vcmask 130048   ;;  %s3153_s26 = sand.u32 1, %s1970_s19  }
  0x19   : > { %s1690_s30 = sshll.u32 %s3153_s26, 3  ;;  %s1732_s6 = sshll.u32 %s2033_s22, 7 }
  0x1a   : > { %1837 = vmatprep.subr.msk.bf16.mxu0 %vm452_vm0, %v347_v1  ;;  %v454_v2 = vsel %vm452_vm0, %v347_v1, 0  ;;  %s3274_s7 = smov (!%p238_p10, %s1692_s7), 127  ;;  %1838 = vmatprep.subr.msk.bf16.mxu1 %vm452_vm0, %v347_v1  ;;  %s3158_s9 = scalar_lea.vmem [#allocation4], %s1690_s30 }
  0x1b   : > { %1770 = vmatpush3.bf16.msra.mxu0 %v454_v2  ;;  %1836 = vmatpush3.bf16.msra.mxu1 %v454_v2  ;;  %s1693_s8 = sshll.u32 %s3274_s7, 3  ;;  %s229_s7 = scalar_lea.vmem [#allocation2], %s1690_s30 }
  0x1c   : > { %s2072_s11 = scalar_lea.vmem %s3239_s0, %s1693_s8  ;;  %s2290_s17 = scalar_lea.vmem %s3242_s3, %s1693_s8 }
  0x1d   : > { %v250_v3 = vld [vmem:[%s2072_s11] sm:$0xff]  ;;  %v251_v4 = vld [vmem:[%s2072_s11 + $0x8] sm:$0xff]  ;;  %v252_v5 = vld [vmem:[%s2072_s11 + $0x10] sm:$0xff]  ;;  %s1557_s8 = sshll.u32 %s229_s7, 4  ;;  %s1570_s10 = sshll.u32 %s3158_s9, 4  ;;  %s3166_s8 = int_to_ptr.vmem [resolvable:$true] %s1557_s8  ;;  %s3174_s10 = int_to_ptr.vmem [resolvable:$true] %s1570_s10 }
  0x1e   : > { %v314_v6 = vpack.c.bf16 %v251_v4, %v250_v3  ;;  %v253_v7 = vld [vmem:[%s2072_s11 + $0x18] sm:$0xff]  ;;  %v254_v8 = vld [vmem:[%s2072_s11 + $0x20] sm:$0xff]  ;;  %v255_v9 = vld [vmem:[%s2072_s11 + $0x28] sm:$0xff]  ;;  %s3164_s13 = scalar_lea.hbm %s3243_s4, %s1732_s6  ;;  %s3172_s15 = scalar_lea.hbm %s3244_s5, %s1732_s6 }
  0x1f   : > { %v315_v10 = vpack.c.bf16 %v253_v7, %v252_v5  ;;  %v316_v11 = vpack.c.bf16 %v255_v9, %v254_v8  ;;  %v256_v12 = vld [vmem:[%s2072_s11 + $0x30] sm:$0xff]  ;;  %v257_v13 = vld [vmem:[%s2072_s11 + $0x38] sm:$0xff]  ;;  %v258_v14 = vld [vmem:[%s2072_s11 + $0x40] sm:$0xff]  ;;  %s1535_s16 = scalar_lea.sflag [#allocation3], %s3153_s26  ;;  %s1980_s23 = smov [#allocation2]  }
  0x20   : > { %1771 = vmatprep.mubr.msk.bf16.mxu0 %vm355_vm1, %v314_v6  ;;  %v259_v15 = vld [vmem:[%s2072_s11 + $0x48] sm:$0xff]  ;;  %v317_v16 = vpack.c.bf16 %v257_v13, %v256_v12  ;;  %v282_v18 = vld [vmem:[%s2072_s11 + $0x100] sm:$0xff]  ;;  %v284_v20 = vld [vmem:[%s2072_s11 + $0x110] sm:$0xff]  ;;  %s1888_s25 = sshll.u32 %s1980_s23, 4  ;;  %s1889_s25 = int_to_ptr.vmem [resolvable:$false] %s1888_s25 }
  0x21   : > { %1772 = vmatmul.mubr.msk.bf16.vlgmr.msra.gmra.mrb[0].mxu0 %vm355_vm1, %v315_v10  ;;  %v318_v17 = vpack.c.bf16 %v259_v15, %v258_v14  ;;  %v283_v19 = vld [vmem:[%s2072_s11 + $0x108] sm:$0xff]  ;;  %v285_v21 = vld [vmem:[%s2072_s11 + $0x118] sm:$0xff]  ;;  %v286_v24 = vld [vmem:[%s2072_s11 + $0x120] sm:$0xff]  ;;  %s1890_s30 = scalar_lea.vmem %s1889_s25, 256  ;;  %p1891_p0 = scmp.lt.s32.totalorder %s3166_s8, %s1889_s25 }
  0x22   : > { %1775 = vmatprep.mubr.msk.bf16.mxu0 %vm355_vm1, %v316_v11  ;;  %v330_v22 = vpack.c.bf16 %v283_v19, %v282_v18  ;;  %v331_v23 = vpack.c.bf16 %v285_v21, %v284_v20  ;;  %v287_v25 = vld [vmem:[%s2072_s11 + $0x128] sm:$0xff]  ;;  %v260_v26 = vld [vmem:[%s2072_s11 + $0x50] sm:$0xff]  ;;  %v261_v27 = vld [vmem:[%s2072_s11 + $0x58] sm:$0xff] }
  0x23   : > { %v332_v28 = vpack.c.bf16 %v287_v25, %v286_v24  ;;  %v262_v29 = vld [vmem:[%s2072_s11 + $0x60] sm:$0xff]  ;;  %v263_v30 = vld [vmem:[%s2072_s11 + $0x68] sm:$0xff]  ;;  %v319_v31 = vpack.c.bf16 %v261_v27, %v260_v26  ;;  %v288_v32 = vld [vmem:[%s2072_s11 + $0x130] sm:$0xff] }
  0x24   : > { %1803 = vmatprep.mubr.msk.bf16.mxu1 %vm355_vm1, %v330_v22  ;;  %v289_v33 = vld [vmem:[%s2072_s11 + $0x138] sm:$0xff]  ;;  %v320_v34 = vpack.c.bf16 %v263_v30, %v262_v29  ;;  %v290_v35 = vld [vmem:[%s2072_s11 + $0x140] sm:$0xff]  ;;  %v291_v36 = vld [vmem:[%s2072_s11 + $0x148] sm:$0xff] }
  0x25   : > { %1804 = vmatmul.mubr.msk.bf16.vlgmr.msra.gmra.mrb[0].mxu1 %vm355_vm1, %v331_v23  ;;  %v333_v37 = vpack.c.bf16 %v289_v33, %v288_v32  ;;  %v334_v38 = vpack.c.bf16 %v291_v36, %v290_v35  ;;  %v264_v39 = vld [vmem:[%s2072_s11 + $0x70] sm:$0xff]  ;;  %v265_v40 = vld [vmem:[%s2072_s11 + $0x78] sm:$0xff]  ;;  %v266_v41 = vld [vmem:[%s2072_s11 + $0x80] sm:$0xff]  ;;  %v811_v35 = vlaneseq }
  0x26   : > { %1807 = vmatprep.mubr.msk.bf16.mxu1 %vm355_vm1, %v332_v28  ;;  %v267_v42 = vld [vmem:[%s2072_s11 + $0x88] sm:$0xff]  ;;  %v321_v43 = vpack.c.bf16 %v265_v40, %v264_v39  ;;  %v292_v44 = vld [vmem:[%s2072_s11 + $0x150] sm:$0xff]  ;;  %v293_v45 = vld [vmem:[%s2072_s11 + $0x158] sm:$0xff] }
  0x27   : > { %v322_v46 = vpack.c.bf16 %v267_v42, %v266_v41  ;;  %v294_v47 = vld [vmem:[%s2072_s11 + $0x160] sm:$0xff]  ;;  %v295_v48 = vld [vmem:[%s2072_s11 + $0x168] sm:$0xff]  ;;  %v335_v49 = vpack.c.bf16 %v293_v45, %v292_v44  ;;  %v268_v51 = vld [vmem:[%s2072_s11 + $0x90] sm:$0xff]  ;;  %v2170_v36 = vshrl.u32 %v811_v35, 7 }
  0x28   : > { %v336_v50 = vpack.c.bf16 %v295_v48, %v294_v47  ;;  %v269_v52 = vld [vmem:[%s2072_s11 + $0x98] sm:$0xff]  ;;  %v270_v53 = vld [vmem:[%s2072_s11 + $0xa0] sm:$0xff]  ;;  %v271_v54 = vld [vmem:[%s2072_s11 + $0xa8] sm:$0xff] }
  0x29   : > { %1776 = vmatmul.mubr.msk.bf16.gmra.mrb[4].mxu0 %vm355_vm1, %v317_v16  ;;  %v323_v55 = vpack.c.bf16 %v269_v52, %v268_v51  ;;  %v296_v56 = vld [vmem:[%s2072_s11 + $0x170] sm:$0xff]  ;;  %v297_v57 = vld [vmem:[%s2072_s11 + $0x178] sm:$0xff]  ;;  %v324_v58 = vpack.c.bf16 %v271_v54, %v270_v53  ;;  %v298_v59 = vld [vmem:[%s2072_s11 + $0x180] sm:$0xff]  ;;  %v815_v39 = vadd.s32 24, %v2170_v36  ;;  %v813_v40 = vadd.s32 8, %v2170_v36 }
  0x2a   : > { %1779 = vmatprep.mubr.msk.bf16.mxu0 %vm355_vm1, %v318_v17  ;;  %v299_v60 = vld [vmem:[%s2072_s11 + $0x188] sm:$0xff]  ;;  %v337_v61 = vpack.c.bf16 %v297_v57, %v296_v56  ;;  %v272_v63 = vld [vmem:[%s2072_s11 + $0xb0] sm:$0xff]  ;;  %v273_v0 = vld [vmem:[%s2072_s11 + $0xb8] sm:$0xff]  ;;  %v818_v41 = vadd.s32 48, %v2170_v36  ;;  %v816_v42 = vadd.s32 32, %v2170_v36  ;;  %v817_v45 = vadd.s32 40, %v2170_v36 }
  0x2b   : > { %v338_v62 = vpack.c.bf16 %v299_v60, %v298_v59  ;;  %v274_v1 = vld [vmem:[%s2072_s11 + $0xc0] sm:$0xff]  ;;  %v275_v2 = vld [vmem:[%s2072_s11 + $0xc8] sm:$0xff]  ;;  %v325_v3 = vpack.c.bf16 %v273_v0, %v272_v63  ;;  %v300_v4 = vld [vmem:[%s2072_s11 + $0x190] sm:$0xff]  ;;  %v820_v47 = vadd.s32 64, %v2170_v36  ;;  %v823_v51 = vadd.s32 88, %v2170_v36 }
  0x2c   : > { %v301_v5 = vld [vmem:[%s2072_s11 + $0x198] sm:$0xff]  ;;  %v326_v6 = vpack.c.bf16 %v275_v2, %v274_v1  ;;  %v302_v7 = vld [vmem:[%s2072_s11 + $0x1a0] sm:$0xff]  ;;  %v303_v8 = vld [vmem:[%s2072_s11 + $0x1a8] sm:$0xff]  ;;  %v821_v53 = vadd.s32 72, %v2170_v36  ;;  %v826_v54 = vadd.s32 112, %v2170_v36  ;;  %v825_v59 = vadd.s32 104, %v2170_v36 }
  0x2d   : > { %1808 = vmatmul.mubr.msk.bf16.gmra.mrb[4].mxu1 %vm355_vm1, %v333_v37  ;;  %v339_v9 = vpack.c.bf16 %v301_v5, %v300_v4  ;;  %v340_v10 = vpack.c.bf16 %v303_v8, %v302_v7  ;;  %v276_v11 = vld [vmem:[%s2072_s11 + $0xd0] sm:$0xff]  ;;  %v277_v12 = vld [vmem:[%s2072_s11 + $0xd8] sm:$0xff]  ;;  %v278_v13 = vld [vmem:[%s2072_s11 + $0xe0] sm:$0xff]  ;;  %v814_v37 = vadd.s32 16, %v2170_v36  ;;  %v830_v63 = vadd.s32 144, %v2170_v36 }
  0x2e   : > { %1811 = vmatprep.mubr.msk.bf16.mxu1 %vm355_vm1, %v334_v38  ;;  %v279_v14 = vld [vmem:[%s2072_s11 + $0xe8] sm:$0xff]  ;;  %v327_v15 = vpack.c.bf16 %v277_v12, %v276_v11  ;;  %v304_v16 = vld [vmem:[%s2072_s11 + $0x1b0] sm:$0xff]  ;;  %v305_v17 = vld [vmem:[%s2072_s11 + $0x1b8] sm:$0xff]  ;;  %v2174_v38 = vstv %s1729_s12  ;;  %v828_v1 = vadd.s32 128, %v2170_v36  ;;  %v831_v2 = vadd.s32 152, %v2170_v36 }
  0x2f   : > { %v328_v18 = vpack.c.bf16 %v279_v14, %v278_v13  ;;  %v306_v19 = vld [vmem:[%s2072_s11 + $0x1c0] sm:$0xff]  ;;  %v307_v20 = vld [vmem:[%s2072_s11 + $0x1c8] sm:$0xff]  ;;  %v341_v21 = vpack.c.bf16 %v305_v17, %v304_v16  ;;  %v280_v23 = vld [vmem:[%s2072_s11 + $0xf0] sm:$0xff]  ;;  %v2182_v44 = vadd.s32 %v2174_v38, %v814_v37  ;;  %v2189_v48 = vadd.s32 %v2174_v38, %v2170_v36 }
  0x30   : > { %v342_v22 = vpack.c.bf16 %v307_v20, %v306_v19  ;;  %v281_v24 = vld [vmem:[%s2072_s11 + $0xf8] sm:$0xff]  ;;  %v308_v26 = vld [vmem:[%s2072_s11 + $0x1d0] sm:$0xff]  ;;  %v310_v28 = vld [vmem:[%s2072_s11 + $0x1e0] sm:$0xff]  ;;  %v2199_v52 = vadd.s32 %v2174_v38, %v818_v41  ;;  %v2205_v56 = vadd.s32 %v2174_v38, %v816_v42  ;;  %v2213_v60 = vadd.s32 %v2174_v38, %v817_v45 }
  0x31   : > { %1780 = vmatmul.mubr.msk.bf16.gmra.mrb[8].mxu0 %vm355_vm1, %v319_v31  ;;  %v329_v25 = vpack.c.bf16 %v281_v24, %v280_v23  ;;  %v309_v27 = vld [vmem:[%s2072_s11 + $0x1d8] sm:$0xff]  ;;  %v311_v29 = vld [vmem:[%s2072_s11 + $0x1e8] sm:$0xff]  ;;  %v312_v32 = vld [vmem:[%s2072_s11 + $0x1f0] sm:$0xff]  ;;  %vm943_vm3 = vcmp.lt.s32.totalorder %v2182_v44, 1024  ;;  %vm941_vm4 = vcmp.lt.s32.totalorder %v2189_v48, 1024  ;;  %v2225_v0 = vadd.s32 %v2174_v38, %v823_v51 }
  0x32   : > { %1783 = vmatprep.mubr.msk.bf16.mxu0 %vm355_vm1, %v320_v34  ;;  %v343_v30 = vpack.c.bf16 %v309_v27, %v308_v26  ;;  %v344_v31 = vpack.c.bf16 %v311_v29, %v310_v28  ;;  %v313_v33 = vld [vmem:[%s2072_s11 + $0x1f8] sm:$0xff]  ;;  %v2231_v4 = vadd.s32 %v2174_v38, %v821_v53  ;;  %v2234_v5 = vadd.s32 %v2174_v38, %v826_v54  ;;  %v2269_v20 = vld [vmem:[%s3241_s2] ss:$0 sm:$0xff] }
  0x33   : > { %v345_v34 = vpack.c.bf16 %v313_v33, %v312_v32  ;;  %v834_v7 = vadd.s32 176, %v2170_v36  ;;  %v835_v11 = vadd.s32 184, %v2170_v36  ;;  %v2251_v12 = vadd.s32 %v2174_v38, %v830_v63 }
  0x34   : > { %v833_v13 = vadd.s32 168, %v2170_v36  ;;  %v838_v14 = vadd.s32 208, %v2170_v36  ;;  %v2257_v16 = vadd.s32 %v2174_v38, %v828_v1  ;;  %v2260_v17 = vadd.s32 %v2174_v38, %v831_v2 }
  0x35   : > { %1812 = vmatmul.mubr.msk.bf16.gmra.mrb[8].mxu1 %vm355_vm1, %v335_v49  ;;  %v2192_v49 = vadd.s32 %v2174_v38, %v815_v39  ;;  %v839_v19 = vadd.s32 216, %v2170_v36  ;;  %v842_v23 = vadd.s32 240, %v2170_v36  ;;  %v840_v24 = vadd.s32 224, %v2170_v36 }
  0x36   : > { %1815 = vmatprep.mubr.msk.bf16.mxu1 %vm355_vm1, %v336_v50  ;;  %v2195_v50 = vadd.s32 %v2174_v38, %v813_v40  ;;  %v2281_v26 = vadd.s32 %v2174_v38, %v835_v11  ;;  %v843_v27 = vadd.s32 248, %v2170_v36  ;;  %v841_v28 = vadd.s32 232, %v2170_v36 }
  0x37   : > { %vm944_vm5 = vcmp.lt.s32.totalorder %v2192_v49, 1024  ;;  %v846_v33 = vadd.s32 272, %v2170_v36  ;;  %vm945_vm7 = vcmp.lt.s32.totalorder %v2205_v56, 1024  ;;  %v2305_v37 = vadd.s32 %v2174_v38, %v839_v19 }
  0x38   : > { %vm942_vm6 = vcmp.lt.s32.totalorder %v2195_v50, 1024  ;;  %v844_v39 = vadd.s32 256, %v2170_v36  ;;  %v847_v40 = vadd.s32 280, %v2170_v36  ;;  %v2314_v45 = vadd.s32 %v2174_v38, %v842_v23 }
  0x39   : > { %1784 = vmatmul.mubr.msk.bf16.gmra.mrb[12].mxu0 %vm355_vm1, %v321_v43  ;;  %v819_v43 = vadd.s32 56, %v2170_v36  ;;  %vm947_vm8 = vcmp.lt.s32.totalorder %v2199_v52, 1024  ;;  %v2324_v53 = vadd.s32 %v2174_v38, %v843_v27  ;;  %v2327_v54 = vadd.s32 %v2174_v38, %v841_v28 }
  0x3a   : > { %1787 = vmatprep.mubr.msk.bf16.mxu0 %vm355_vm1, %v322_v46  ;;  %v822_v46 = vadd.s32 80, %v2170_v36  ;;  %v2338_v1 = vadd.s32 %v2174_v38, %v846_v33  ;;  %v850_v44 = vadd.s32 304, %v2170_v36  ;;  %vm946_vm10 = vcmp.lt.s32.totalorder %v2213_v60, 1024 }
  0x3b   : > { %v2208_v57 = vadd.s32 %v2174_v38, %v819_v43  ;;  %v848_v11 = vadd.s32 288, %v2170_v36  ;;  %v849_v27 = vadd.s32 296, %v2170_v36  ;;  %vm952_vm13 = vcmp.lt.s32.totalorder %v2225_v0, 1024 }
  0x3c   : > { %vm950_vm14 = vcmp.lt.s32.totalorder %v2231_v4, 1024 }
  0x3d   : > { %1816 = vmatmul.mubr.msk.bf16.gmra.mrb[12].mxu1 %vm355_vm1, %v337_v61  ;;  %v2216_v61 = vadd.s32 %v2174_v38, %v822_v46  ;;  %v2317_v46 = vadd.s32 %v2174_v38, %v840_v24  ;;  %vm948_vm9 = vcmp.lt.s32.totalorder %v2208_v57, 1024 }
  0x3e   : > { %1819 = vmatprep.mubr.msk.bf16.mxu1 %vm355_vm1, %v338_v62  ;;  %v2219_v62 = vadd.s32 %v2174_v38, %v820_v47 }
  0x3f   : > { %vm951_vm12 = vcmp.lt.s32.totalorder %v2216_v61, 1024 }
  0x40   : > { %vm949_vm11 = vcmp.lt.s32.totalorder %v2219_v62, 1024 }
  0x41   : > { %1788 = vmatmul.mubr.msk.bf16.gmra.mrb[16].mxu0 %vm355_vm1, %v323_v55  ;;  %v824_v55 = vadd.s32 96, %v2170_v36 }
  0x42   : > { %1791 = vmatprep.mubr.msk.bf16.mxu0 %vm355_vm1, %v324_v58  ;;  %v827_v58 = vadd.s32 120, %v2170_v36 }
  0x44   : > { %v2243_v8 = vadd.s32 %v2174_v38, %v827_v58 }
  0x45   : > { %1820 = vmatmul.mubr.msk.bf16.gmra.mrb[16].mxu1 %vm355_vm1, %v339_v9  ;;  %v2246_v9 = vadd.s32 %v2174_v38, %v825_v59 }
  0x46   : > { %1823 = vmatprep.mubr.msk.bf16.mxu1 %vm355_vm1, %v340_v10  ;;  %v832_v10 = vadd.s32 160, %v2170_v36 }
  0x47   : > { %vm954_vm0 = vcmp.lt.s32.totalorder %v2246_v9, 1024 }
  0x49   : > { %1792 = vmatmul.mubr.msk.bf16.gmra.mrb[20].mxu0 %vm355_vm1, %v325_v3  ;;  %v829_v3 = vadd.s32 136, %v2170_v36 }
  0x4a   : > { %1795 = vmatprep.mubr.msk.bf16.mxu0 %vm355_vm1, %v326_v6  ;;  %v2237_v6 = vadd.s32 %v2174_v38, %v824_v55  ;;  %v845_v55 = vadd.s32 264, %v2170_v36 }
  0x4c   : > { %v2363_v50 = vadd.s32 %v2174_v38, %v845_v55  ;;  %vm953_vm15 = vcmp.lt.s32.totalorder %v2237_v6, 1024 }
  0x4d   : > { %1824 = vmatmul.mubr.msk.bf16.gmra.mrb[20].mxu1 %vm355_vm1, %v341_v21  ;;  %v2272_v21 = vadd.s32 %v2174_v38, %v834_v7  ;;  %v2346_v7 = vadd.s32 %v2174_v38, %v847_v40 }
  0x4e   : > { %1827 = vmatprep.mubr.msk.bf16.mxu1 %vm355_vm1, %v342_v22  ;;  %v837_v22 = vadd.s32 200, %v2170_v36 }
  0x50   : > { %v2311_v43 = vadd.s32 %v2174_v38, %v837_v22 }
  0x51   : > { %1796 = vmatmul.mubr.msk.bf16.gmra.mrb[24].mxu0 %vm355_vm1, %v327_v15  ;;  %v836_v15 = vadd.s32 192, %v2170_v36 }
  0x52   : > { %1799 = vmatprep.mubr.msk.bf16.mxu0 %vm355_vm1, %v328_v18  ;;  %v2263_v18 = vadd.s32 %v2174_v38, %v829_v3  ;;  %v2343_v3 = vadd.s32 %v2174_v38, %v844_v39 }
  0x53   : > { %v2299_v32 = vadd.s32 %v2174_v38, %v836_v15 }
  0x55   : > { %1828 = vmatmul.mubr.msk.bf16.gmra.mrb[24].mxu1 %vm355_vm1, %v343_v30  ;;  %v2293_v30 = vadd.s32 %v2174_v38, %v833_v13  ;;  %v851_v13 = vadd.s32 312, %v2170_v36 }
  0x56   : > { %1831 = vmatprep.mubr.msk.bf16.mxu1 %vm355_vm1, %v344_v31  ;;  %v2296_v31 = vadd.s32 %v2174_v38, %v838_v14 }
  0x59   : > { %1800 = vmatmul.mubr.msk.bf16.gmra.mrb[28].mxu0 %vm355_vm1, %v329_v25  ;;  %v2278_v25 = vadd.s32 %v2174_v38, %v832_v10 }
  0x5d   : > { %1832 = vmatmul.mubr.msk.bf16.gmra.mrb[28].mxu1 %vm355_vm1, %v345_v34  ;;  %vm955_vm1 = vcmp.lt.s32.totalorder %v2234_v5, 1024  ;;  %v856_v5 = vadd.s32 352, %v2170_v36 }
  0xf4   : > { %v1773_v29 = vpop.f32.mrb[0].mxu0 }
  0xf5   : > { %v499_v34 = vadd.f32 %v1773_v29, %v2269_v20  ;;  %v490_v35 = vpop.f32.mrb[1].mxu0 }
  0xf6   : > { %v491_v41 = vadd.f32 %v2269_v20, %v490_v35  ;;  %v1774_v42 = vpop.f32.mrb[2].mxu0 }
  0xf7   : > { %748 = vst.msk [vmem:[%s2290_s17 + $0x10] sm:$0xff] %vm745_vm2, %v499_v34  ;;  %v502_v47 = vadd.f32 %v1774_v42, %v2269_v20  ;;  %v493_v51 = vpop.f32.mrb[3].mxu0  ;;  %v1135_v58 = vsel %vm943_vm3, %v499_v34, 0.0  ;;  %vm956_vm3 = vcmp.lt.s32.totalorder %v2243_v8, 1024 }
  0xf8   : > { %746 = vst.msk [vmem:[%s2290_s17] sm:$0xff] %vm745_vm2, %v491_v41  ;;  %v1133_v59 = vsel %vm941_vm4, %v491_v41, 0.0  ;;  %v494_v63 = vadd.f32 %v2269_v20, %v493_v51  ;;  %v1332_v14 = vmul.f32 %v1135_v58, %v1135_v58  ;;  %v1200_v22 = vsel %vm745_vm2, %v1135_v58, 0.0 }
  0xf9   : > { %v1330_v2 = vmul.f32 %v1133_v59, %v1133_v59  ;;  %749 = vst.msk [vmem:[%s2290_s17 + $0x18] sm:$0xff] %vm745_vm2, %v502_v47  ;;  %v1136_v48 = vsel %vm944_vm5, %v502_v47, 0.0  ;;  %v1197_v15 = vsel %vm745_vm2, %v1133_v59, 0.0  ;;  %v2373_v47 = vadd.s32 %v2174_v38, %v850_v44  ;;  %v1805_v59 = vpop.f32.mrb[0].mxu1 }
  0xfa   : > { %747 = vst.msk [vmem:[%s2290_s17 + $0x8] sm:$0xff] %vm745_vm2, %v494_v63  ;;  %v1134_v10 = vsel %vm942_vm6, %v494_v63, 0.0  ;;  %v1333_v29 = vmul.f32 %v1136_v48, %v1136_v48  ;;  %v1397_v51 = vsel %vm745_vm2, %v1332_v14, 0.0  ;;  %v2380_v63 = vadd.s32 %v2174_v38, %v848_v11  ;;  %v618_v14 = vpop.f32.mrb[1].mxu1 }
  0xfb   : > { %v1198_v19 = vsel %vm745_vm2, %v1134_v10, 0.0  ;;  %v1331_v49 = vmul.f32 %v1134_v10, %v1134_v10  ;;  %v1394_v28 = vsel %vm745_vm2, %v1330_v2, 0.0  ;;  %v2383_v2 = vadd.s32 %v2174_v38, %v851_v13 }
  0xfc   : > { %v1199_v23 = vadd.f32 %v1198_v19, %v1197_v15  ;;  %v1777_v24 = vpop.f32.mrb[4].mxu0  ;;  %v1202_v10 = vsel %vm745_vm2, %v1136_v48, 0.0  ;;  %v2392_v19 = vadd.s32 %v2174_v38, %v849_v27  ;;  %v1399_v11 = vsel %vm745_vm2, %v1333_v29, 0.0  ;;  %v1806_v48 = vpop.f32.mrb[2].mxu1 }
  0xfd   : > { %v1395_v33 = vsel %vm745_vm2, %v1331_v49, 0.0  ;;  %v515_v34 = vadd.f32 %v1777_v24, %v2269_v20  ;;  %v506_v35 = vpop.f32.mrb[5].mxu0  ;;  %v621_v24 = vpop.f32.mrb[3].mxu1  ;;  %v854_v27 = vadd.s32 336, %v2170_v36  ;;  %v2409_v52 = vadd.f32 %v2269_v20, %v618_v14 }
  0xfe   : > { %v1201_v39 = vadd.f32 %v1200_v22, %v1199_v23  ;;  %v1396_v40 = vadd.f32 %v1395_v33, %v1394_v28  ;;  %v507_v41 = vadd.f32 %v2269_v20, %v506_v35  ;;  %v1778_v42 = vpop.f32.mrb[6].mxu0  ;;  %v852_v28 = vadd.s32 320, %v2170_v36 }
  0xff   : > { %752 = vst.msk [vmem:[%s2290_s17 + $0x30] sm:$0xff] %vm745_vm2, %v515_v34  ;;  %v518_v55 = vadd.f32 %v1778_v42, %v2269_v20  ;;  %v509_v58 = vpop.f32.mrb[7].mxu0  ;;  %v1139_v56 = vsel %vm947_vm8, %v515_v34, 0.0  ;;  %v2412_v34 = vadd.f32 %v1806_v48, %v2269_v20  ;;  %v2415_v42 = vadd.s32 344, %v2170_v36  ;;  %778 = vst.msk [vmem:[%s2290_s17 + $0x100] sm:$0xff] %vm745_vm2, %v2409_v52 }
 0x100   : > { %v1398_v15 = vadd.f32 %v1397_v51, %v1396_v40  ;;  %750 = vst.msk [vmem:[%s2290_s17 + $0x20] sm:$0xff] %vm745_vm2, %v507_v41  ;;  %v1137_v44 = vsel %vm945_vm7, %v507_v41, 0.0  ;;  %v1203_v49 = vadd.f32 %v1202_v10, %v1201_v39  ;;  %v510_v35 = vadd.f32 %v2269_v20, %v509_v58 }
 0x101   : > { %v1204_v13 = vsel %vm745_vm2, %v1137_v44, 0.0  ;;  %v1334_v22 = vmul.f32 %v1137_v44, %v1137_v44  ;;  %753 = vst.msk [vmem:[%s2290_s17 + $0x38] sm:$0xff] %vm745_vm2, %v518_v55  ;;  %v2406_v39 = vadd.f32 %v1805_v59, %v2269_v20  ;;  %v1140_v51 = vsel %vm948_vm9, %v518_v55, 0.0  ;;  %781 = vst.msk [vmem:[%s2290_s17 + $0x118] sm:$0xff] %vm745_vm2, %v2412_v34 }
 0x102   : > { %v1400_v23 = vadd.f32 %v1399_v11, %v1398_v15  ;;  %v1205_v29 = vadd.f32 %v1204_v13, %v1203_v49  ;;  %751 = vst.msk [vmem:[%s2290_s17 + $0x28] sm:$0xff] %vm745_vm2, %v510_v35  ;;  %v1138_v58 = vsel %vm946_vm10, %v510_v35, 0.0  ;;  %v2429_v15 = vadd.f32 %v2269_v20, %v621_v24 }
 0x103   : > { %v1401_v33 = vsel %vm745_vm2, %v1334_v22, 0.0  ;;  %780 = vst.msk [vmem:[%s2290_s17 + $0x110] sm:$0xff] %vm745_vm2, %v2406_v39  ;;  %v1336_v57 = vmul.f32 %v1139_v56, %v1139_v56  ;;  %v1206_v55 = vsel %vm745_vm2, %v1138_v58, 0.0  ;;  %v1335_v44 = vmul.f32 %v1138_v58, %v1138_v58  ;;  %v2446_v22 = vpop.f32.mrb[4].mxu1 }
 0x104   : > { %v1402_v40 = vadd.f32 %v1401_v33, %v1400_v23  ;;  %v1781_v41 = vpop.f32.mrb[8].mxu0  ;;  %v1207_v11 = vadd.f32 %v1206_v55, %v1205_v29  ;;  %779 = vst.msk [vmem:[%s2290_s17 + $0x108] sm:$0xff] %vm745_vm2, %v2429_v15  ;;  %v2449_v48 = vadd.s32 %v2174_v38, %v854_v27  ;;  %v853_v23 = vadd.s32 328, %v2170_v36 }
 0x105   : > { %v531_v59 = vadd.f32 %v1781_v41, %v2269_v20  ;;  %v522_v10 = vpop.f32.mrb[9].mxu0  ;;  %v1208_v24 = vsel %vm745_vm2, %v1139_v56, 0.0  ;;  %v1337_v29 = vmul.f32 %v1140_v51, %v1140_v51  ;;  %v1403_v33 = vsel %vm745_vm2, %v1335_v44, 0.0  ;;  %v2459_v41 = vpop.f32.mrb[5].mxu1 }
 0x106   : > { %v523_v14 = vadd.f32 %v2269_v20, %v522_v10  ;;  %v1782_v60 = vpop.f32.mrb[10].mxu0  ;;  %3251 = vst [vmem:[#allocation8_spill] sm:$0xff] %v2449_v48  ;;  %v1209_v58 = vadd.f32 %v1208_v24, %v1207_v11  ;;  %v1404_v10 = vadd.f32 %v1403_v33, %v1402_v40  ;;  %v2466_v56 = vpop.f32.mrb[6].mxu1  ;;  %v1405_v62 = vsel %vm745_vm2, %v1336_v57, 0.0 }
 0x107   : > { %756 = vst.msk [vmem:[%s2290_s17 + $0x50] sm:$0xff] %vm745_vm2, %v531_v59  ;;  %v534_v49 = vadd.f32 %v1782_v60, %v2269_v20  ;;  %v525_v13 = vpop.f32.mrb[11].mxu0  ;;  %v1143_v27 = vsel %vm951_vm12, %v531_v59, 0.0  ;;  %v1210_v44 = vsel %vm745_vm2, %v1140_v51, 0.0  ;;  %v2472_v40 = vpop.f32.mrb[7].mxu1  ;;  %v2477_v24 = vadd.s32 %v2174_v38, %v852_v28 }
 0x108   : > { %754 = vst.msk [vmem:[%s2290_s17 + $0x40] sm:$0xff] %vm745_vm2, %v523_v14  ;;  %v1141_v35 = vsel %vm949_vm11, %v523_v14, 0.0  ;;  %v526_v60 = vadd.f32 %v2269_v20, %v525_v13  ;;  %v1406_v61 = vadd.f32 %v1405_v62, %v1404_v10  ;;  %v1211_v59 = vadd.f32 %v1210_v44, %v1209_v58 }
 0x109   : > { %v1338_v55 = vmul.f32 %v1141_v35, %v1141_v35  ;;  %757 = vst.msk [vmem:[%s2290_s17 + $0x58] sm:$0xff] %vm745_vm2, %v534_v49  ;;  %v1212_v14 = vsel %vm745_vm2, %v1141_v35, 0.0  ;;  %v1144_v11 = vsel %vm952_vm13, %v534_v49, 0.0  ;;  %v1407_v33 = vsel %vm745_vm2, %v1337_v29, 0.0 }
 0x10a   : > { %v1340_v48 = vmul.f32 %v1143_v27, %v1143_v27  ;;  %755 = vst.msk [vmem:[%s2290_s17 + $0x48] sm:$0xff] %vm745_vm2, %v526_v60  ;;  %v1142_v51 = vsel %vm950_vm14, %v526_v60, 0.0  ;;  %v1213_v35 = vadd.f32 %v1212_v14, %v1211_v59  ;;  %v1408_v10 = vadd.f32 %v1407_v33, %v1406_v61  ;;  %v2496_v33 = vpop.f32.mrb[8].mxu1 }
 0x10b   : > { %v1409_v57 = vsel %vm745_vm2, %v1338_v55, 0.0  ;;  %v1214_v58 = vsel %vm745_vm2, %v1142_v51, 0.0  ;;  %v1339_v0 = vmul.f32 %v1142_v51, %v1142_v51  ;;  %vm957_vm4 = vcmp.lt.s32.totalorder %v2257_v16, 1024 }
 0x10c   : > { %v1785_v13 = vpop.f32.mrb[12].mxu0  ;;  %v1341_v28 = vmul.f32 %v1144_v11, %v1144_v11  ;;  %v2491_v4 = vadd.s32 %v2174_v38, %v2415_v42  ;;  %v1410_v44 = vadd.f32 %v1409_v57, %v1408_v10  ;;  %v1215_v14 = vadd.f32 %v1214_v58, %v1213_v35 }
 0x10d   : > { %v538_v49 = vpop.f32.mrb[13].mxu0  ;;  %v547_v29 = vadd.f32 %v1785_v13, %v2269_v20  ;;  %v1411_v60 = vsel %vm745_vm2, %v1339_v0, 0.0  ;;  %vm958_vm5 = vcmp.lt.s32.totalorder %v2263_v18, 1024  ;;  %v1216_v51 = vsel %vm745_vm2, %v1143_v27, 0.0  ;;  %v2507_v13 = vpop.f32.mrb[9].mxu1 }
 0x10e   : > { %v539_v55 = vadd.f32 %v2269_v20, %v538_v49  ;;  %v1786_v62 = vpop.f32.mrb[14].mxu0  ;;  %3252 = vst [vmem:[#allocation9_spill] sm:$0xff] %v2491_v4  ;;  %vm959_vm6 = vcmp.lt.s32.totalorder %v2251_v12, 1024  ;;  %v2510_v35 = vadd.s32 %v2174_v38, %v853_v23  ;;  %v1413_v10 = vsel %vm745_vm2, %v1340_v48, 0.0  ;;  %v2516_v6 = vpop.f32.mrb[10].mxu1 }
 0x10f   : > { %v550_v61 = vadd.f32 %v1786_v62, %v2269_v20  ;;  %v541_v59 = vpop.f32.mrb[15].mxu0  ;;  %760 = vst.msk [vmem:[%s2290_s17 + $0x70] sm:$0xff] %vm745_vm2, %v547_v29  ;;  %v1217_v27 = vadd.f32 %v1216_v51, %v1215_v14  ;;  %v1412_v58 = vadd.f32 %v1411_v60, %v1410_v44  ;;  %vm960_vm7 = vcmp.lt.s32.totalorder %v2260_v17, 1024  ;;  %v2525_v23 = vpop.f32.mrb[11].mxu1 }
 0x110   : > { %758 = vst.msk [vmem:[%s2290_s17 + $0x60] sm:$0xff] %vm745_vm2, %v539_v55  ;;  %v1145_v42 = vsel %vm953_vm15, %v539_v55, 0.0  ;;  %v542_v57 = vadd.f32 %v2269_v20, %v541_v59  ;;  %3253 = vst [vmem:[#allocation10_spill] sm:$0xff] %v2510_v35  ;;  %v858_v0 = vadd.s32 368, %v2170_v36  ;;  %v1218_v49 = vsel %vm745_vm2, %v1144_v11, 0.0 }
 0x111   : > { %761 = vst.msk [vmem:[%s2290_s17 + $0x78] sm:$0xff] %vm745_vm2, %v550_v61  ;;  %v1220_v55 = vsel %vm745_vm2, %v1145_v42, 0.0  ;;  %v1342_v62 = vmul.f32 %v1145_v42, %v1145_v42  ;;  %3254 = vst [vmem:[#allocation11_spill] sm:$0xff] %v2525_v23  ;;  %v1415_v44 = vsel %vm745_vm2, %v1341_v28, 0.0  ;;  %v1414_v14 = vadd.f32 %v1413_v10, %v1412_v58 }
 0x112   : > { %759 = vst.msk [vmem:[%s2290_s17 + $0x68] sm:$0xff] %vm745_vm2, %v542_v57  ;;  %v1146_v48 = vsel %vm954_vm0, %v542_v57, 0.0  ;;  %v1147_v60 = vsel %vm955_vm1, %v547_v29, 0.0  ;;  %v1219_v59 = vadd.f32 %v1218_v49, %v1217_v27  ;;  %v1148_v11 = vsel %vm956_vm3, %v550_v61, 0.0 }
 0x113   : > { %v1417_v51 = vsel %vm745_vm2, %v1342_v62, 0.0  ;;  %v1222_v42 = vsel %vm745_vm2, %v1146_v48, 0.0  ;;  %v1343_v4 = vmul.f32 %v1146_v48, %v1146_v48  ;;  %v1416_v35 = vadd.f32 %v1415_v44, %v1414_v14  ;;  %v2544_v44 = vpop.f32.mrb[12].mxu1 }
 0x114   : > { %v1789_v9 = vpop.f32.mrb[16].mxu0  ;;  %v1221_v57 = vadd.f32 %v1220_v55, %v1219_v59  ;;  %vm961_vm8 = vcmp.lt.s32.totalorder %v2278_v25, 1024  ;;  %v1344_v29 = vmul.f32 %v1147_v60, %v1147_v60  ;;  %v859_v27 = vadd.s32 376, %v2170_v36  ;;  %v2553_v59 = vpop.f32.mrb[13].mxu1 }
 0x115   : > { %v563_v23 = vadd.f32 %v1789_v9, %v2269_v20  ;;  %v554_v28 = vpop.f32.mrb[17].mxu0  ;;  %v1419_v10 = vsel %vm745_vm2, %v1343_v4, 0.0  ;;  %v1418_v58 = vadd.f32 %v1417_v51, %v1416_v35  ;;  %v1345_v49 = vmul.f32 %v1148_v11, %v1148_v11  ;;  %v2562_v16 = vpop.f32.mrb[14].mxu1 }
 0x116   : > { %v555_v8 = vadd.f32 %v2269_v20, %v554_v28  ;;  %v1790_v61 = vpop.f32.mrb[18].mxu0  ;;  %v1223_v55 = vadd.f32 %v1222_v42, %v1221_v57  ;;  %vm962_vm9 = vcmp.lt.s32.totalorder %v2293_v30, 1024  ;;  %v1224_v4 = vsel %vm745_vm2, %v1147_v60, 0.0  ;;  %3256 = vst [vmem:[#allocation13_spill] sm:$0xff] %v2562_v16 }
 0x117   : > { %764 = vst.msk [vmem:[%s2290_s17 + $0x90] sm:$0xff] %vm745_vm2, %v563_v23  ;;  %v566_v62 = vadd.f32 %v1790_v61, %v2269_v20  ;;  %v557_v48 = vpop.f32.mrb[19].mxu0  ;;  %vm963_vm10 = vcmp.lt.s32.totalorder %v2272_v21, 1024  ;;  %v857_v51 = vadd.s32 360, %v2170_v36  ;;  %v1420_v9 = vadd.f32 %v1419_v10, %v1418_v58  ;;  %v2571_v58 = vpop.f32.mrb[15].mxu1 }
 0x118   : > { %762 = vst.msk [vmem:[%s2290_s17 + $0x80] sm:$0xff] %vm745_vm2, %v555_v8  ;;  %v1149_v35 = vsel %vm957_vm4, %v555_v8, 0.0  ;;  %v558_v14 = vadd.f32 %v2269_v20, %v557_v48  ;;  %v1225_v42 = vadd.f32 %v1224_v4, %v1223_v55  ;;  %vm964_vm11 = vcmp.lt.s32.totalorder %v2281_v26, 1024  ;;  %3257 = vst [vmem:[#allocation14_spill] sm:$0xff] %v2571_v58 }
 0x119   : > { %v1346_v57 = vmul.f32 %v1149_v35, %v1149_v35  ;;  %765 = vst.msk [vmem:[%s2290_s17 + $0x98] sm:$0xff] %vm745_vm2, %v566_v62  ;;  %v2560_v60 = vadd.s32 %v2174_v38, %v858_v0  ;;  %v1421_v28 = vsel %vm745_vm2, %v1344_v29, 0.0  ;;  %v1226_v8 = vsel %vm745_vm2, %v1148_v11, 0.0 }
 0x11a   : > { %v1228_v61 = vsel %vm745_vm2, %v1149_v35, 0.0  ;;  %763 = vst.msk [vmem:[%s2290_s17 + $0x88] sm:$0xff] %vm745_vm2, %v558_v14  ;;  %v1150_v10 = vsel %vm958_vm5, %v558_v14, 0.0  ;;  %v1423_v55 = vsel %vm745_vm2, %v1345_v49, 0.0  ;;  %v1422_v48 = vadd.f32 %v1421_v28, %v1420_v9 }
 0x11b   : > { %3255 = vst [vmem:[#allocation12_spill] sm:$0xff] %v2560_v60  ;;  %v1151_v0 = vsel %vm959_vm6, %v563_v23, 0.0  ;;  %v1227_v4 = vadd.f32 %v1226_v8, %v1225_v42  ;;  %v1425_v29 = vsel %vm745_vm2, %v1346_v57, 0.0  ;;  %v1152_v11 = vsel %vm960_vm7, %v566_v62, 0.0 }
 0x11c   : > { %v1230_v35 = vsel %vm745_vm2, %v1150_v10, 0.0  ;;  %v1347_v60 = vmul.f32 %v1150_v10, %v1150_v10  ;;  %v1793_v18 = vpop.f32.mrb[20].mxu0  ;;  %v1424_v16 = vadd.f32 %v1423_v55, %v1422_v48  ;;  %vm965_vm12 = vcmp.lt.s32.totalorder %v2299_v32, 1024 }
 0x11d   : > { %v1229_v14 = vadd.f32 %v1228_v61, %v1227_v4  ;;  %v579_v58 = vadd.f32 %v1793_v18, %v2269_v20  ;;  %v570_v49 = vpop.f32.mrb[21].mxu0  ;;  %v2583_v12 = vadd.s32 %v2174_v38, %v856_v5  ;;  %v1348_v23 = vmul.f32 %v1151_v0, %v1151_v0  ;;  %v2594_v5 = vpop.f32.mrb[16].mxu1 }
 0x11e   : > { %v1427_v17 = vsel %vm745_vm2, %v1347_v60, 0.0  ;;  %v571_v62 = vadd.f32 %v2269_v20, %v570_v49  ;;  %v1794_v42 = vpop.f32.mrb[22].mxu0  ;;  %v2588_v9 = vadd.s32 %v2174_v38, %v859_v27  ;;  %v1426_v57 = vadd.f32 %v1425_v29, %v1424_v16  ;;  %v2606_v48 = vpop.f32.mrb[17].mxu1 }
 0x11f   : > { %v1349_v28 = vmul.f32 %v1152_v11, %v1152_v11  ;;  %v1231_v8 = vadd.f32 %v1230_v35, %v1229_v14  ;;  %768 = vst.msk [vmem:[%s2290_s17 + $0xb0] sm:$0xff] %vm745_vm2, %v579_v58  ;;  %v582_v61 = vadd.f32 %v1794_v42, %v2269_v20  ;;  %v573_v10 = vpop.f32.mrb[23].mxu0  ;;  %vm966_vm13 = vcmp.lt.s32.totalorder %v2311_v43, 1024  ;;  %v2613_v18 = vpop.f32.mrb[18].mxu1 }
 0x120   : > { %v1232_v60 = vsel %vm745_vm2, %v1151_v0, 0.0  ;;  %766 = vst.msk [vmem:[%s2290_s17 + $0xa0] sm:$0xff] %vm745_vm2, %v571_v62  ;;  %v1153_v27 = vsel %vm961_vm8, %v571_v62, 0.0  ;;  %v574_v16 = vadd.f32 %v2269_v20, %v573_v10  ;;  %vm967_vm14 = vcmp.lt.s32.totalorder %v2296_v31, 1024 }
 0x121   : > { %v2604_v55 = vadd.s32 %v2174_v38, %v857_v51  ;;  %v1233_v4 = vadd.f32 %v1232_v60, %v1231_v8  ;;  %v1428_v29 = vadd.f32 %v1427_v17, %v1426_v57  ;;  %v1350_v35 = vmul.f32 %v1153_v27, %v1153_v27  ;;  %769 = vst.msk [vmem:[%s2290_s17 + $0xb8] sm:$0xff] %vm745_vm2, %v582_v61  ;;  %v2623_v17 = vpop.f32.mrb[19].mxu1 }
 0x122   : > { %v2611_v0 = vadd.s32 400, %v2170_v36  ;;  %v1429_v25 = vsel %vm745_vm2, %v1348_v23, 0.0  ;;  %v1234_v14 = vsel %vm745_vm2, %v1152_v11, 0.0  ;;  %v1236_v49 = vsel %vm745_vm2, %v1153_v27, 0.0  ;;  %767 = vst.msk [vmem:[%s2290_s17 + $0xa8] sm:$0xff] %vm745_vm2, %v574_v16 }
 0x123   : > { %v1154_v51 = vsel %vm962_vm9, %v574_v16, 0.0  ;;  %vm968_vm15 = vcmp.lt.s32.totalorder %v2305_v37, 1024  ;;  %v1431_v62 = vsel %vm745_vm2, %v1349_v28, 0.0  ;;  %v1430_v42 = vadd.f32 %v1429_v25, %v1428_v29 }
 0x124   : > { %v1155_v57 = vsel %vm963_vm10, %v579_v58, 0.0  ;;  %v1235_v23 = vadd.f32 %v1234_v14, %v1233_v4  ;;  %v1433_v11 = vsel %vm745_vm2, %v1350_v35, 0.0  ;;  %v1156_v8 = vsel %vm964_vm11, %v582_v61, 0.0  ;;  %v1797_v60 = vpop.f32.mrb[24].mxu0 }
 0x125   : > { %v1238_v10 = vsel %vm745_vm2, %v1154_v51, 0.0  ;;  %v1351_v30 = vmul.f32 %v1154_v51, %v1154_v51  ;;  %vm973_vm0 = vcmp.lt.s32.totalorder %v2343_v3, 1024  ;;  %v1432_v16 = vadd.f32 %v1431_v62, %v1430_v42  ;;  %v586_v21 = vpop.f32.mrb[25].mxu0  ;;  %v2656_v62 = vpop.f32.mrb[20].mxu1 }
 0x126   : > { %v1237_v27 = vadd.f32 %v1236_v49, %v1235_v23  ;;  %v595_v28 = vadd.f32 %v1797_v60, %v2269_v20  ;;  %vm969_vm1 = vcmp.lt.s32.totalorder %v2317_v46, 1024  ;;  %v2637_v58 = vadd.f32 %v2446_v22, %v2269_v20  ;;  %v1798_v29 = vpop.f32.mrb[26].mxu0 }
 0x127   : > { %v1352_v26 = vmul.f32 %v1155_v57, %v1155_v57  ;;  %v1435_v61 = vsel %vm745_vm2, %v1351_v30, 0.0  ;;  %v587_v4 = vadd.f32 %v2269_v20, %v586_v21  ;;  %vm975_vm3 = vcmp.lt.s32.totalorder %v2338_v1, 1024  ;;  %v589_v49 = vpop.f32.mrb[27].mxu0 }
 0x128   : > { %v2644_v35 = vadd.f32 %v2269_v20, %v2459_v41  ;;  %v1434_v25 = vadd.f32 %v1433_v11, %v1432_v16  ;;  %v1239_v14 = vadd.f32 %v1238_v10, %v1237_v27  ;;  %772 = vst.msk [vmem:[%s2290_s17 + $0xd0] sm:$0xff] %vm745_vm2, %v595_v28  ;;  %v598_v22 = vadd.f32 %v1798_v29, %v2269_v20  ;;  %v2668_v10 = vpop.f32.mrb[21].mxu1 }
 0x129   : > { %vm970_vm4 = vcmp.lt.s32.totalorder %v2327_v54, 1024  ;;  %784 = vst.msk [vmem:[%s2290_s17 + $0x130] sm:$0xff] %vm745_vm2, %v2637_v58  ;;  %v2654_v51 = vadd.s32 384, %v2170_v36  ;;  %v1240_v41 = vsel %vm745_vm2, %v1155_v57, 0.0  ;;  %v1353_v42 = vmul.f32 %v1156_v8, %v1156_v8  ;;  %770 = vst.msk [vmem:[%s2290_s17 + $0xc0] sm:$0xff] %vm745_vm2, %v587_v4  ;;  %v2675_v16 = vpop.f32.mrb[22].mxu1 }
 0x12a   : > { %v1157_v23 = vsel %vm965_vm12, %v587_v4, 0.0  ;;  %v590_v11 = vadd.f32 %v2269_v20, %v589_v49  ;;  %vm971_vm5 = vcmp.lt.s32.totalorder %v2314_v45, 1024  ;;  %782 = vst.msk [vmem:[%s2290_s17 + $0x120] sm:$0xff] %vm745_vm2, %v2644_v35  ;;  %3258 = vst [vmem:[#allocation15_spill] sm:$0xff] %v2668_v10  ;;  %v1241_v30 = vadd.f32 %v1240_v41, %v1239_v14 }
 0x12b   : > { %v1436_v60 = vadd.f32 %v1435_v61, %v1434_v25  ;;  %v1354_v27 = vmul.f32 %v1157_v23, %v1157_v23  ;;  %773 = vst.msk [vmem:[%s2290_s17 + $0xd8] sm:$0xff] %vm745_vm2, %v598_v22  ;;  %v2673_v57 = vadd.s32 408, %v2170_v36  ;;  %3259 = vst [vmem:[#allocation16_spill] sm:$0xff] %v2675_v16  ;;  %v1437_v32 = vsel %vm745_vm2, %v1352_v26, 0.0  ;;  %v2685_v61 = vpop.f32.mrb[23].mxu1 }
 0x12c   : > { %v1242_v21 = vsel %vm745_vm2, %v1156_v8, 0.0  ;;  %v1244_v4 = vsel %vm745_vm2, %v1157_v23, 0.0  ;;  %771 = vst.msk [vmem:[%s2290_s17 + $0xc8] sm:$0xff] %vm745_vm2, %v590_v11  ;;  %v1158_v29 = vsel %vm966_vm13, %v590_v11, 0.0  ;;  %vm972_vm6 = vcmp.lt.s32.totalorder %v2324_v53, 1024  ;;  %v1801_v11 = vpop.f32.mrb[28].mxu0 }
 0x12d   : > { %v1438_v25 = vadd.f32 %v1437_v32, %v1436_v60  ;;  %v1159_v14 = vsel %vm967_vm14, %v595_v28, 0.0  ;;  %v1243_v49 = vadd.f32 %v1242_v21, %v1241_v30  ;;  %v2690_v26 = vadd.s32 392, %v2170_v36  ;;  %v602_v28 = vpop.f32.mrb[29].mxu0 }
 0x12e   : > { %v1439_v8 = vsel %vm745_vm2, %v1353_v42, 0.0  ;;  %v1441_v41 = vsel %vm745_vm2, %v1354_v27, 0.0  ;;  %v1246_v23 = vsel %vm745_vm2, %v1158_v29, 0.0  ;;  %v1355_v43 = vmul.f32 %v1158_v29, %v1158_v29  ;;  %v1802_v32 = vpop.f32.mrb[30].mxu0 }
 0x12f   : > { %v1245_v16 = vadd.f32 %v1244_v4, %v1243_v49  ;;  %v1440_v10 = vadd.f32 %v1439_v8, %v1438_v25  ;;  %v1160_v60 = vsel %vm968_vm15, %v598_v22, 0.0  ;;  %v611_v31 = vadd.f32 %v1801_v11, %v2269_v20  ;;  %v605_v29 = vpop.f32.mrb[31].mxu0  ;;  %v2712_v49 = vpop.f32.mrb[24].mxu1 }
 0x130   : > { %vm976_vm7 = vcmp.lt.s32.totalorder %v2346_v7, 1024  ;;  %v1356_v30 = vmul.f32 %v1159_v14, %v1159_v14  ;;  %v1443_v42 = vsel %vm745_vm2, %v1355_v43, 0.0  ;;  %v603_v27 = vadd.f32 %v2269_v20, %v602_v28 }
 0x131   : > { %vm974_vm8 = vcmp.lt.s32.totalorder %v2363_v50, 1024  ;;  %v2704_v21 = vadd.s32 %v2174_v38, %v2611_v0  ;;  %v1442_v37 = vadd.f32 %v1441_v41, %v1440_v10  ;;  %v1247_v22 = vadd.f32 %v1246_v23, %v1245_v16  ;;  %776 = vst.msk [vmem:[%s2290_s17 + $0xf0] sm:$0xff] %vm745_vm2, %v611_v31  ;;  %v2721_v16 = vpop.f32.mrb[25].mxu1 }
 0x132   : > { %v614_v4 = vadd.f32 %v1802_v32, %v2269_v20  ;;  %v1165_v25 = vsel %vm973_vm0, %v2409_v52, 0.0  ;;  %v1248_v8 = vsel %vm745_vm2, %v1159_v14, 0.0  ;;  %v1357_v43 = vmul.f32 %v1160_v60, %v1160_v60  ;;  %774 = vst.msk [vmem:[%s2290_s17 + $0xe0] sm:$0xff] %vm745_vm2, %v603_v27  ;;  %v2730_v23 = vpop.f32.mrb[26].mxu1 }
 0x133   : > { %v1161_v0 = vsel %vm969_vm1, %v603_v27, 0.0  ;;  %v606_v10 = vadd.f32 %v2269_v20, %v605_v29  ;;  %vm977_vm9 = vcmp.lt.s32.totalorder %v2380_v63, 1024  ;;  %v1249_v41 = vadd.f32 %v1248_v8, %v1247_v22  ;;  %v2739_v27 = vpop.f32.mrb[27].mxu1 }
 0x134   : > { %v1444_v3 = vadd.f32 %v1443_v42, %v1442_v37  ;;  %v1358_v52 = vmul.f32 %v1161_v0, %v1161_v0  ;;  %777 = vst.msk [vmem:[%s2290_s17 + $0xf8] sm:$0xff] %vm745_vm2, %v614_v4  ;;  %v2728_v14 = vsel %vm975_vm3, %v2406_v39, 0.0  ;;  %v1445_v46 = vsel %vm745_vm2, %v1356_v30, 0.0 }
 0x135   : > { %v1250_v11 = vsel %vm745_vm2, %v1160_v60, 0.0  ;;  %v1252_v28 = vsel %vm745_vm2, %v1161_v0, 0.0  ;;  %775 = vst.msk [vmem:[%s2290_s17 + $0xe8] sm:$0xff] %vm745_vm2, %v606_v10  ;;  %v1162_v42 = vsel %vm970_vm4, %v606_v10, 0.0  ;;  %v1163_v1 = vsel %vm971_vm5, %v611_v31, 0.0 }
 0x136   : > { %v1446_v32 = vadd.f32 %v1445_v46, %v1444_v3  ;;  %v1251_v39 = vadd.f32 %v1250_v11, %v1249_v41  ;;  %v1362_v37 = vmul.f32 %v1165_v25, %v1165_v25  ;;  %v1447_v22 = vsel %vm745_vm2, %v1357_v43, 0.0 }
 0x137   : > { %v1449_v60 = vsel %vm745_vm2, %v1358_v52, 0.0  ;;  %v1254_v30 = vsel %vm745_vm2, %v1162_v42, 0.0  ;;  %v1359_v29 = vmul.f32 %v1162_v42, %v1162_v42  ;;  %vm979_vm10 = vcmp.lt.s32.totalorder %v2373_v47, 1024 }
 0x138   : > { %v1253_v54 = vadd.f32 %v1252_v28, %v1251_v39  ;;  %v1448_v8 = vadd.f32 %v1447_v22, %v1446_v32  ;;  %v1164_v0 = vsel %vm972_vm6, %v614_v4, 0.0  ;;  %v2751_v45 = vadd.f32 %v2466_v56, %v2269_v20 }
 0x139   : > { %v1360_v31 = vmul.f32 %v1163_v1, %v1163_v1  ;;  %v1451_v43 = vsel %vm745_vm2, %v1359_v29, 0.0  ;;  %v2756_v10 = vadd.f32 %v2269_v20, %v2472_v40  ;;  %vm978_vm11 = vcmp.lt.s32.totalorder %v2392_v19, 1024  ;;  %v2774_v40 = vpop.f32.mrb[28].mxu1  ;;  %v3264_v19 = vld [vmem:[#allocation13_spill] sm:$0xff] }
 0x13a   : > { %v2761_v41 = vadd.f32 %v2496_v33, %v2269_v20  ;;  %v1450_v53 = vadd.f32 %v1449_v60, %v1448_v8  ;;  %v1255_v4 = vadd.f32 %v1254_v30, %v1253_v54  ;;  %785 = vst.msk [vmem:[%s2290_s17 + $0x138] sm:$0xff] %vm745_vm2, %v2751_v45  ;;  %v2768_v56 = vadd.s32 %v2174_v38, %v2654_v51  ;;  %v2789_v51 = vpop.f32.mrb[29].mxu1 }
 0x13b   : > { %v2772_v3 = vadd.s32 %v2174_v38, %v2673_v57  ;;  %v1256_v52 = vsel %vm745_vm2, %v1163_v1, 0.0  ;;  %v1361_v46 = vmul.f32 %v1164_v0, %v1164_v0  ;;  %v1364_v33 = vmul.f32 %v2728_v14, %v2728_v14  ;;  %783 = vst.msk [vmem:[%s2290_s17 + $0x128] sm:$0xff] %vm745_vm2, %v2756_v10 }
 0x13c   : > { %v1168_v11 = vsel %vm976_vm7, %v2412_v34, 0.0  ;;  %vm980_vm12 = vcmp.lt.s32.totalorder %v2383_v2, 1024  ;;  %788 = vst.msk [vmem:[%s2290_s17 + $0x150] sm:$0xff] %vm745_vm2, %v2761_v41  ;;  %v1257_v57 = vadd.f32 %v1256_v52, %v1255_v4  ;;  %v1452_v28 = vadd.f32 %v1451_v43, %v1450_v53  ;;  %v2795_v34 = vpop.f32.mrb[30].mxu1 }
 0x13d   : > { %v1260_v42 = vsel %vm745_vm2, %v1165_v25, 0.0  ;;  %v1166_v7 = vsel %vm974_vm8, %v2429_v15, 0.0  ;;  %v1453_v32 = vsel %vm745_vm2, %v1360_v31, 0.0  ;;  %v1258_v1 = vsel %vm745_vm2, %v1164_v0, 0.0  ;;  %v2803_v60 = vpop.f32.mrb[31].mxu1  ;;  %v3261_v0 = vld [vmem:[#allocation8_spill] sm:$0xff] }
 0x13e   : > { %v1457_v39 = vsel %vm745_vm2, %v1362_v37, 0.0  ;;  %v651_v22 = vadd.f32 %v2269_v20, %v2507_v13  ;;  %vm981_vm13 = vcmp.lt.s32.totalorder %v2477_v24, 1024  ;;  %v1454_v25 = vadd.f32 %v1453_v32, %v1452_v28  ;;  %v3260_v13 = vld [vmem:[#allocation11_spill] sm:$0xff] }
 0x13f   : > { %v1259_v30 = vadd.f32 %v1258_v1, %v1257_v57  ;;  %v1169_v50 = vsel %vm977_vm9, %v2644_v35, 0.0  ;;  %v2810_v15 = vadd.f32 %v2516_v6, %v2269_v20  ;;  %v1455_v37 = vsel %vm745_vm2, %v1361_v46, 0.0  ;;  %v3263_v1 = vld [vmem:[#allocation9_spill] sm:$0xff] }
 0x140   : > { %v1363_v29 = vmul.f32 %v1166_v7, %v1166_v7  ;;  %786 = vst.msk [vmem:[%s2290_s17 + $0x140] sm:$0xff] %vm745_vm2, %v651_v22  ;;  %v2817_v54 = vadd.f32 %v2269_v20, %v3260_v13  ;;  %v2821_v8 = vadd.f32 %v2544_v44, %v2269_v20  ;;  %v1456_v35 = vadd.f32 %v1455_v37, %v1454_v25  ;;  %v3262_v44 = vld [vmem:[#allocation10_spill] sm:$0xff] }
 0x141   : > { %v1261_v63 = vadd.f32 %v1260_v42, %v1259_v30  ;;  %vm983_vm14 = vcmp.lt.s32.totalorder %v3261_v0, 1024  ;;  %789 = vst.msk [vmem:[%s2290_s17 + $0x158] sm:$0xff] %vm745_vm2, %v2810_v15  ;;  %v2829_v6 = vadd.s32 %v2174_v38, %v2690_v26  ;;  %v866_v31 = vadd.s32 432, %v2170_v36 }
 0x142   : > { %v1365_v43 = vmul.f32 %v1168_v11, %v1168_v11  ;;  %v1262_v53 = vsel %vm745_vm2, %v1166_v7, 0.0  ;;  %v1366_v4 = vmul.f32 %v1169_v50, %v1169_v50  ;;  %787 = vst.msk [vmem:[%s2290_s17 + $0x148] sm:$0xff] %vm745_vm2, %v2817_v54  ;;  %vm982_vm15 = vcmp.lt.s32.totalorder %v3262_v44, 1024  ;;  %792 = vst.msk [vmem:[%s2290_s17 + $0x170] sm:$0xff] %vm745_vm2, %v2821_v8 }
 0x143   : > { %v2842_v52 = vadd.f32 %v2269_v20, %v2553_v59  ;;  %v1458_v26 = vadd.f32 %v1457_v39, %v1456_v35  ;;  %v1263_v46 = vadd.f32 %v1262_v53, %v1261_v63  ;;  %v1171_v57 = vsel %vm979_vm10, %v2637_v58, 0.0  ;;  %v3265_v35 = vld [vmem:[#allocation14_spill] sm:$0xff] }
 0x144   : > { %v864_v28 = vadd.s32 416, %v2170_v36  ;;  %v1264_v42 = vsel %vm745_vm2, %v2728_v14, 0.0  ;;  %v1461_v7 = vsel %vm745_vm2, %v1364_v33, 0.0  ;;  %v1459_v32 = vsel %vm745_vm2, %v1363_v29, 0.0 }
 0x145   : > { %vm984_vm0 = vcmp.lt.s32.totalorder %v3263_v1, 1024  ;;  %790 = vst.msk [vmem:[%s2290_s17 + $0x160] sm:$0xff] %vm745_vm2, %v2842_v52  ;;  %v867_v59 = vadd.s32 440, %v2170_v36  ;;  %v1266_v39 = vsel %vm745_vm2, %v1168_v11, 0.0  ;;  %v1265_v47 = vadd.f32 %v1264_v42, %v1263_v46 }
 0x146   : > { %v1460_v58 = vadd.f32 %v1459_v32, %v1458_v26  ;;  %v1170_v25 = vsel %vm978_vm11, %v2756_v10, 0.0  ;;  %v1463_v14 = vsel %vm745_vm2, %v1365_v43, 0.0  ;;  %v1368_v33 = vmul.f32 %v1171_v57, %v1171_v57  ;;  %v3266_v26 = vld [vmem:[#allocation12_spill] sm:$0xff] }
 0x147   : > { %v1268_v30 = vsel %vm745_vm2, %v1169_v50, 0.0  ;;  %v1465_v37 = vsel %vm745_vm2, %v1366_v4, 0.0  ;;  %vm985_vm1 = vcmp.lt.s32.totalorder %v2583_v12, 1024  ;;  %v1267_v13 = vadd.f32 %v1266_v39, %v1265_v47 }
 0x148   : > { %v1462_v29 = vadd.f32 %v1461_v7, %v1460_v58  ;;  %v1172_v11 = vsel %vm980_vm12, %v2751_v45, 0.0  ;;  %v2870_v10 = vadd.f32 %v3264_v19, %v2269_v20  ;;  %v1367_v63 = vmul.f32 %v1170_v25, %v1170_v25 }
 0x149   : > { %v2874_v50 = vadd.f32 %v2269_v20, %v3265_v35  ;;  %v2878_v43 = vadd.f32 %v2594_v5, %v2269_v20  ;;  %v2882_v53 = vadd.f32 %v2269_v20, %v2606_v48  ;;  %v1269_v2 = vadd.f32 %v1268_v30, %v1267_v13 }
 0x14a   : > { %v1464_v45 = vadd.f32 %v1463_v14, %v1462_v29  ;;  %v1173_v4 = vsel %vm981_vm13, %v651_v22, 0.0  ;;  %vm987_vm3 = vcmp.lt.s32.totalorder %v3266_v26, 1024  ;;  %793 = vst.msk [vmem:[%s2290_s17 + $0x178] sm:$0xff] %vm745_vm2, %v2870_v10  ;;  %v2892_v46 = vadd.f32 %v2613_v18, %v2269_v20 }
 0x14b   : > { %v1369_v5 = vmul.f32 %v1172_v11, %v1172_v11  ;;  %v1270_v42 = vsel %vm745_vm2, %v1170_v25, 0.0  ;;  %791 = vst.msk [vmem:[%s2290_s17 + $0x168] sm:$0xff] %vm745_vm2, %v2874_v50  ;;  %vm986_vm4 = vcmp.lt.s32.totalorder %v2604_v55, 1024  ;;  %796 = vst.msk [vmem:[%s2290_s17 + $0x190] sm:$0xff] %vm745_vm2, %v2878_v43  ;;  %v2906_v24 = vadd.s32 %v2174_v38, %v866_v31 }
 0x14c   : > { %794 = vst.msk [vmem:[%s2290_s17 + $0x180] sm:$0xff] %vm745_vm2, %v2882_v53  ;;  %v865_v20 = vadd.s32 424, %v2170_v36  ;;  %v1466_v48 = vadd.f32 %v1465_v37, %v1464_v45  ;;  %v1271_v18 = vadd.f32 %v1270_v42, %v1269_v2  ;;  %797 = vst.msk [vmem:[%s2290_s17 + $0x198] sm:$0xff] %vm745_vm2, %v2892_v46  ;;  %v2913_v22 = vadd.s32 %v2174_v38, %v864_v28 }
 0x14d   : > { %v2916_v7 = vadd.s32 %v2174_v38, %v867_v59  ;;  %v1272_v32 = vsel %vm745_vm2, %v1171_v57, 0.0  ;;  %v1467_v39 = vsel %vm745_vm2, %v1367_v63, 0.0  ;;  %v1175_v31 = vsel %vm983_vm14, %v2761_v41, 0.0  ;;  %v2935_v41 = vld [vmem:[%s3241_s2] ss:$0 sm:$0xff] }
 0x14e   : > { %v1370_v47 = vmul.f32 %v1173_v4, %v1173_v4  ;;  %v1469_v58 = vsel %vm745_vm2, %v1368_v33, 0.0  ;;  %v1273_v25 = vadd.f32 %v1272_v32, %v1271_v18  ;;  %v1468_v14 = vadd.f32 %v1467_v39, %v1466_v48 }
 0x14f   : > { %v1174_v28 = vsel %vm982_vm15, %v2817_v54, 0.0  ;;  %vm988_vm5 = vcmp.lt.s32.totalorder %v2588_v9, 1024  ;;  %v1274_v57 = vsel %vm745_vm2, %v1172_v11, 0.0  ;;  %v1471_v59 = vsel %vm745_vm2, %v1369_v5, 0.0 }
 0x150   : > { %v1276_v30 = vsel %vm745_vm2, %v1173_v4, 0.0  ;;  %vm989_vm6 = vcmp.lt.s32.totalorder %v2768_v56, 1024  ;;  %v2939_v0 = vadd.f32 %v2935_v41, %v2623_v17  ;;  %v1470_v54 = vadd.f32 %v1469_v58, %v1468_v14  ;;  %v3267_v17 = vld [vmem:[#allocation15_spill] sm:$0xff] }
 0x151   : > { %v1372_v44 = vmul.f32 %v1175_v31, %v1175_v31  ;;  %v1275_v33 = vadd.f32 %v1274_v57, %v1273_v25  ;;  %v1176_v37 = vsel %vm984_vm0, %v2810_v15, 0.0  ;;  %v1473_v29 = vsel %vm745_vm2, %v1370_v47, 0.0 }
 0x152   : > { %v1371_v13 = vmul.f32 %v1174_v28, %v1174_v28  ;;  %795 = vst.msk [vmem:[%s2290_s17 + $0x188] sm:$0xff] %vm745_vm2, %v2939_v0  ;;  %v2950_v11 = vadd.f32 %v2935_v41, %v2656_v62  ;;  %v2954_v19 = vadd.f32 %v2935_v41, %v3267_v17  ;;  %v1472_v35 = vadd.f32 %v1471_v59, %v1470_v54  ;;  %v3268_v62 = vld [vmem:[#allocation16_spill] sm:$0xff] }
 0x153   : > { %v1277_v63 = vadd.f32 %v1276_v30, %v1275_v33  ;;  %v1177_v15 = vsel %vm985_vm1, %v2842_v52, 0.0  ;;  %v2960_v1 = vadd.s32 %v2174_v38, %v865_v20  ;;  %v1373_v2 = vmul.f32 %v1176_v37, %v1176_v37 }
 0x154   : > { %v1278_v45 = vsel %vm745_vm2, %v1174_v28, 0.0  ;;  %vm990_vm7 = vcmp.lt.s32.totalorder %v2829_v6, 1024  ;;  %800 = vst.msk [vmem:[%s2290_s17 + $0x1b0] sm:$0xff] %vm745_vm2, %v2950_v11  ;;  %798 = vst.msk [vmem:[%s2290_s17 + $0x1a0] sm:$0xff] %vm745_vm2, %v2954_v19  ;;  %v2972_v4 = vadd.f32 %v2935_v41, %v3268_v62  ;;  %v870_v12 = vadd.s32 464, %v2170_v36 }
 0x155   : > { %v1280_v52 = vsel %vm745_vm2, %v1175_v31, 0.0  ;;  %v1474_v5 = vadd.f32 %v1473_v29, %v1472_v35  ;;  %v1279_v42 = vadd.f32 %v1278_v45, %v1277_v63  ;;  %vm991_vm8 = vcmp.lt.s32.totalorder %v2704_v21, 1024 }
 0x156   : > { %v868_v20 = vadd.s32 448, %v2170_v36  ;;  %v1477_v48 = vsel %vm745_vm2, %v1372_v44, 0.0  ;;  %v1475_v18 = vsel %vm745_vm2, %v1371_v13, 0.0  ;;  %v1179_v32 = vsel %vm987_vm3, %v2821_v8, 0.0  ;;  %801 = vst.msk [vmem:[%s2290_s17 + $0x1b8] sm:$0xff] %vm745_vm2, %v2972_v4 }
 0x157   : > { %v1374_v39 = vmul.f32 %v1177_v15, %v1177_v15  ;;  %v1282_v31 = vsel %vm745_vm2, %v1176_v37, 0.0  ;;  %v1281_v47 = vadd.f32 %v1280_v52, %v1279_v42  ;;  %v1476_v58 = vadd.f32 %v1475_v18, %v1474_v5 }
 0x158   : > { %v1178_v25 = vsel %vm986_vm4, %v2874_v50, 0.0  ;;  %vm992_vm9 = vcmp.lt.s32.totalorder %v2772_v3, 1024  ;;  %v1479_v14 = vsel %vm745_vm2, %v1373_v2, 0.0  ;;  %v1284_v8 = vsel %vm745_vm2, %v1177_v15, 0.0 }
 0x159   : > { %v2995_v26 = vadd.f32 %v2935_v41, %v2685_v61  ;;  %v2999_v28 = vadd.f32 %v2935_v41, %v2712_v49  ;;  %v1478_v57 = vadd.f32 %v1477_v48, %v1476_v58  ;;  %v1283_v59 = vadd.f32 %v1282_v31, %v1281_v47 }
 0x15a   : > { %v3003_v55 = vadd.f32 %v2935_v41, %v2721_v16  ;;  %v3007_v50 = vadd.f32 %v2935_v41, %v2730_v23  ;;  %v1481_v61 = vsel %vm745_vm2, %v1374_v39, 0.0  ;;  %v1180_v30 = vsel %vm988_vm5, %v2870_v10, 0.0 }
 0x15b   : > { %v1375_v49 = vmul.f32 %v1178_v25, %v1178_v25  ;;  %799 = vst.msk [vmem:[%s2290_s17 + $0x1a8] sm:$0xff] %vm745_vm2, %v2995_v26  ;;  %804 = vst.msk [vmem:[%s2290_s17 + $0x1d0] sm:$0xff] %vm745_vm2, %v2999_v28  ;;  %v3021_v16 = vadd.f32 %v2935_v41, %v2739_v27  ;;  %v1285_v23 = vadd.f32 %v1284_v8, %v1283_v59  ;;  %v1181_v44 = vsel %vm989_vm6, %v2882_v53, 0.0 }
 0x15c   : > { %v1480_v54 = vadd.f32 %v1479_v14, %v1478_v57  ;;  %vm993_vm10 = vcmp.lt.s32.totalorder %v2913_v22, 1024  ;;  %802 = vst.msk [vmem:[%s2290_s17 + $0x1c0] sm:$0xff] %vm745_vm2, %v3003_v55  ;;  %805 = vst.msk [vmem:[%s2290_s17 + $0x1d8] sm:$0xff] %vm745_vm2, %v3007_v50  ;;  %v1376_v9 = vmul.f32 %v1179_v32, %v1179_v32  ;;  %v1286_v10 = vsel %vm745_vm2, %v1178_v25, 0.0 }
 0x15d   : > { %v871_v27 = vadd.s32 472, %v2170_v36  ;;  %803 = vst.msk [vmem:[%s2290_s17 + $0x1c8] sm:$0xff] %vm745_vm2, %v3021_v16  ;;  %v869_v33 = vadd.s32 456, %v2170_v36  ;;  %v1377_v53 = vmul.f32 %v1180_v30, %v1180_v30  ;;  %v1287_v37 = vadd.f32 %v1286_v10, %v1285_v23 }
 0x15e   : > { %v1482_v56 = vadd.f32 %v1481_v61, %v1480_v54  ;;  %v3040_v29 = vadd.s32 %v2174_v38, %v870_v12  ;;  %v1288_v13 = vsel %vm745_vm2, %v1179_v32, 0.0  ;;  %v1483_v17 = vsel %vm745_vm2, %v1375_v49, 0.0 }
 0x15f   : > { %v1378_v63 = vmul.f32 %v1181_v44, %v1181_v44  ;;  %vm995_vm11 = vcmp.lt.s32.totalorder %v2906_v24, 1024  ;;  %v933_v35 = vadd.s32 %v2174_v38, %v868_v20  ;;  %v1289_v15 = vadd.f32 %v1288_v13, %v1287_v37 }
 0x160   : > { %v1484_v2 = vadd.f32 %v1483_v17, %v1482_v56  ;;  %v1182_v45 = vsel %vm990_vm7, %v2939_v0, 0.0  ;;  %v3051_v62 = vadd.f32 %v2935_v41, %v2774_v40  ;;  %v1485_v12 = vsel %vm745_vm2, %v1376_v9, 0.0 }
 0x161   : > { %v1290_v52 = vsel %vm745_vm2, %v1180_v30, 0.0  ;;  %v1183_v5 = vsel %vm991_vm8, %v2878_v43, 0.0  ;;  %v1292_v42 = vsel %vm745_vm2, %v1181_v44, 0.0  ;;  %v1487_v20 = vsel %vm745_vm2, %v1377_v53, 0.0 }
 0x162   : > { %v1486_v48 = vadd.f32 %v1485_v12, %v1484_v2  ;;  %v1291_v6 = vadd.f32 %v1290_v52, %v1289_v15  ;;  %808 = vst.msk [vmem:[%s2290_s17 + $0x1f0] sm:$0xff] %vm745_vm2, %v3051_v62  ;;  %v3065_v40 = vadd.f32 %v2935_v41, %v2789_v51  ;;  %v1489_v0 = vsel %vm745_vm2, %v1378_v63, 0.0 }
 0x163   : > { %v1184_v21 = vsel %vm992_vm9, %v2892_v46, 0.0  ;;  %v1379_v43 = vmul.f32 %v1182_v45, %v1182_v45  ;;  %v3073_v18 = vadd.f32 %v2935_v41, %v2795_v34  ;;  %v1185_v31 = vsel %vm993_vm10, %v2954_v19, 0.0 }
 0x164   : > { %v1293_v32 = vadd.f32 %v1292_v42, %v1291_v6  ;;  %v1488_v39 = vadd.f32 %v1487_v20, %v1486_v48  ;;  %806 = vst.msk [vmem:[%s2290_s17 + $0x1e0] sm:$0xff] %vm745_vm2, %v3065_v40  ;;  %v3083_v51 = vadd.f32 %v2935_v41, %v2803_v60  ;;  %v1380_v3 = vmul.f32 %v1183_v5, %v1183_v5 }
 0x165   : > { %v1294_v46 = vsel %vm745_vm2, %v1182_v45, 0.0  ;;  %vm996_vm12 = vcmp.lt.s32.totalorder %v2916_v7, 1024  ;;  %vm994_vm13 = vcmp.lt.s32.totalorder %v2960_v1, 1024  ;;  %809 = vst.msk [vmem:[%s2290_s17 + $0x1f8] sm:$0xff] %vm745_vm2, %v3073_v18  ;;  %v936_v19 = vadd.s32 %v2174_v38, %v871_v27 }
 0x166   : > { %v1490_v34 = vadd.f32 %v1489_v0, %v1488_v39  ;;  %v1295_v22 = vadd.f32 %v1294_v46, %v1293_v32  ;;  %v934_v47 = vadd.s32 %v2174_v38, %v869_v33  ;;  %807 = vst.msk [vmem:[%s2290_s17 + $0x1e8] sm:$0xff] %vm745_vm2, %v3083_v51  ;;  %v1296_v60 = vsel %vm745_vm2, %v1183_v5, 0.0  ;;  %s1884_s17 = scalar_lea.vmem %s3166_s8, 128 }
 0x167   : > { %v1381_v41 = vmul.f32 %v1184_v21, %v1184_v21  ;;  %v1491_v58 = vsel %vm745_vm2, %v1379_v43, 0.0  ;;  %v1382_v25 = vmul.f32 %v1185_v31, %v1185_v31  ;;  %vm999_vm14 = vcmp.lt.s32.totalorder %v3040_v29, 1024  ;;  %p1885_p11 = scmp.ne.s32.totalorder %s3166_s8, %s1884_s17  ;;  %p1892_p1 = scmp.lt.s32.totalorder %s1890_s30, %s1884_s17 }
 0x168   : > { %v1297_v1 = vadd.f32 %v1296_v60, %v1295_v22  ;;  %v1492_v14 = vadd.f32 %v1491_v58, %v1490_v34  ;;  %v1186_v8 = vsel %vm994_vm13, %v2995_v26, 0.0  ;;  %vm997_vm15 = vcmp.lt.s32.totalorder %v933_v35, 1024 }
 0x169   : > { %v1493_v57 = vsel %vm745_vm2, %v1380_v3, 0.0  ;;  %v1298_v59 = vsel %vm745_vm2, %v1184_v21, 0.0  ;;  %v1300_v61 = vsel %vm745_vm2, %v1185_v31, 0.0  ;;  %v872_v30 = vadd.s32 480, %v2170_v36  ;;  %p1886_p12 = pnand %p1885_p11, %p2050_p5  ;;  %p1893_p2 = por %p1892_p1, %p1891_p0 }
 0x16a   : > { %v1494_v49 = vadd.f32 %v1493_v57, %v1492_v14  ;;  %v1187_v23 = vsel %vm995_vm11, %v2950_v11, 0.0  ;;  %v1299_v54 = vadd.f32 %v1298_v59, %v1297_v1  ;;  %vm1000_vm0 = vcmp.lt.s32.totalorder %v936_v19, 1024 }
 0x16b   : > { %v1495_v44 = vsel %vm745_vm2, %v1381_v41, 0.0  ;;  %v1497_v26 = vsel %vm745_vm2, %v1382_v25, 0.0  ;;  %v1383_v9 = vmul.f32 %v1186_v8, %v1186_v8  ;;  %v873_v10 = vadd.s32 488, %v2170_v36  ;;  %p1887_p13 = pneg %p1886_p12 }
 0x16c   : > { %v1301_v27 = vadd.f32 %v1300_v61, %v1299_v54  ;;  %v1496_v33 = vadd.f32 %v1495_v44, %v1494_v49  ;;  %v1188_v56 = vsel %vm996_vm12, %v2972_v4, 0.0  ;;  %v1189_v53 = vsel %vm997_vm15, %v3003_v55, 0.0 }
 0x16d   : > { %v1384_v24 = vmul.f32 %v1187_v23, %v1187_v23  ;;  %v1302_v11 = vsel %vm745_vm2, %v1186_v8, 0.0  ;;  %vm998_vm1 = vcmp.lt.s32.totalorder %v934_v47, 1024  ;;  %v937_v37 = vadd.s32 %v2174_v38, %v872_v30  ;;  %p1894_p3 = pnand %p1893_p2, %p1887_p13 }
 0x16e   : > { %v1498_v13 = vadd.f32 %v1497_v26, %v1496_v33  ;;  %v1303_v17 = vadd.f32 %v1302_v11, %v1301_v27  ;;  %v874_v63 = vadd.s32 496, %v2170_v36  ;;  %v875_v15 = vadd.s32 504, %v2170_v36 }
 0x16f   : > { %v1304_v2 = vsel %vm745_vm2, %v1187_v23, 0.0  ;;  %v1385_v45 = vmul.f32 %v1188_v56, %v1188_v56  ;;  %v1499_v7 = vsel %vm745_vm2, %v1383_v9, 0.0  ;;  %v1386_v4 = vmul.f32 %v1189_v53, %v1189_v53 }
 0x170   : > { %v1305_v35 = vadd.f32 %v1304_v2, %v1303_v17  ;;  %v1500_v55 = vadd.f32 %v1499_v7, %v1498_v13  ;;  %v1190_v12 = vsel %vm998_vm1, %v3021_v16, 0.0  ;;  %v938_v52 = vadd.s32 %v2174_v38, %v873_v10 }
 0x171   : > { %v1501_v5 = vsel %vm745_vm2, %v1384_v24, 0.0  ;;  %v1306_v42 = vsel %vm745_vm2, %v1188_v56, 0.0  ;;  %v1308_v20 = vsel %vm745_vm2, %v1189_v53, 0.0  ;;  %vm1001_vm3 = vcmp.lt.s32.totalorder %v937_v37, 1024 }
 0x172   : > { %v1502_v36 = vadd.f32 %v1501_v5, %v1500_v55  ;;  %v1191_v48 = vsel %vm999_vm14, %v2999_v28, 0.0  ;;  %v1307_v6 = vadd.f32 %v1306_v42, %v1305_v35  ;;  %v939_v0 = vadd.s32 %v2174_v38, %v874_v63 }
 0x173   : > { %v1503_v21 = vsel %vm745_vm2, %v1385_v45, 0.0  ;;  %v1505_v16 = vsel %vm745_vm2, %v1386_v4, 0.0  ;;  %v1387_v43 = vmul.f32 %v1190_v12, %v1190_v12  ;;  %v1192_v31 = vsel %vm1000_vm0, %v3007_v50, 0.0 }
 0x174   : > { %v1309_v32 = vadd.f32 %v1308_v20, %v1307_v6  ;;  %v1504_v39 = vadd.f32 %v1503_v21, %v1502_v36  ;;  %v1193_v3 = vsel %vm1001_vm3, %v3065_v40, 0.0  ;;  %v1388_v46 = vmul.f32 %v1191_v48, %v1191_v48 }
 0x175   : > { %v1310_v34 = vsel %vm745_vm2, %v1190_v12, 0.0  ;;  %v940_v28 = vadd.s32 %v2174_v38, %v875_v15  ;;  %vm1002_vm4 = vcmp.lt.s32.totalorder %v938_v52, 1024  ;;  %vm1003_vm5 = vcmp.lt.s32.totalorder %v939_v0, 1024 }
 0x176   : > { %v1506_v29 = vadd.f32 %v1505_v16, %v1504_v39  ;;  %v1311_v22 = vadd.f32 %v1310_v34, %v1309_v32  ;;  %v1312_v47 = vsel %vm745_vm2, %v1191_v48, 0.0  ;;  %v1389_v60 = vmul.f32 %v1192_v31, %v1192_v31 }
 0x177   : > { %v1507_v41 = vsel %vm745_vm2, %v1387_v43, 0.0  ;;  %v1390_v58 = vmul.f32 %v1193_v3, %v1193_v3  ;;  %v1194_v50 = vsel %vm1002_vm4, %v3083_v51, 0.0  ;;  %v1509_v40 = vsel %vm745_vm2, %v1388_v46, 0.0 }
 0x178   : > { %v1313_v25 = vadd.f32 %v1312_v47, %v1311_v22  ;;  %v1508_v19 = vadd.f32 %v1507_v41, %v1506_v29  ;;  %v1314_v1 = vsel %vm745_vm2, %v1192_v31, 0.0  ;;  %v1316_v38 = vsel %vm745_vm2, %v1193_v3, 0.0 }
 0x179   : > { %vm1004_vm6 = vcmp.lt.s32.totalorder %v940_v28, 1024  ;;  %v1195_v8 = vsel %vm1003_vm5, %v3051_v62, 0.0  ;;  %v1511_v59 = vsel %vm745_vm2, %v1389_v60, 0.0  ;;  %v1513_v61 = vsel %vm745_vm2, %v1390_v58, 0.0 }
 0x17a   : > { %v1510_v14 = vadd.f32 %v1509_v40, %v1508_v19  ;;  %v1315_v57 = vadd.f32 %v1314_v1, %v1313_v25  ;;  %v1391_v30 = vmul.f32 %v1194_v50, %v1194_v50  ;;  %v1196_v51 = vsel %vm1004_vm6, %v3073_v18, 0.0 }
 0x17b   : > { %v1392_v54 = vmul.f32 %v1195_v8, %v1195_v8  ;;  %v1318_v44 = vsel %vm745_vm2, %v1194_v50, 0.0  ;;  %v1320_v10 = vsel %vm745_vm2, %v1195_v8, 0.0  ;;  %v1393_v27 = vmul.f32 %v1196_v51, %v1196_v51 }
 0x17c   : > { %v1317_v49 = vadd.f32 %v1316_v38, %v1315_v57  ;;  %v1512_v23 = vadd.f32 %v1511_v59, %v1510_v14  ;;  %v1515_v62 = vsel %vm745_vm2, %v1391_v30, 0.0  ;;  %v1322_v24 = vsel %vm745_vm2, %v1196_v51, 0.0 }
 0x17d   : > { %v1517_v53 = vsel %vm745_vm2, %v1392_v54, 0.0  ;;  %v1519_v18 = vsel %vm745_vm2, %v1393_v27, 0.0 }
 0x17e   : > { %v1514_v26 = vadd.f32 %v1513_v61, %v1512_v23  ;;  %v1319_v9 = vadd.f32 %v1318_v44, %v1317_v49 }
 0x180   : > { %v1321_v33 = vadd.f32 %v1320_v10, %v1319_v9  ;;  %v1516_v56 = vadd.f32 %v1515_v62, %v1514_v26 }
 0x182   : > { %v1323_v11 = vadd.f32 %v1322_v24, %v1321_v33  ;;  %v1518_v37 = vadd.f32 %v1517_v53, %v1516_v56 }
 0x184   : > { %v1324_v13 = vrot.slane %v1323_v11, 4  ;;  %v1520_v17 = vadd.f32 %v1519_v18, %v1518_v37 }
 0x186   : > { %v1325_v63 = vadd.f32 %v1324_v13, %v1323_v11  ;;  %v1521_v15 = vrot.slane %v1520_v17, 4 }
 0x188   : > { %v1326_v2 = vrot.slane %v1325_v63, 2  ;;  %v1522_v45 = vadd.f32 %v1521_v15, %v1520_v17 }
 0x18a   : > { %v1327_v7 = vadd.f32 %v1326_v2, %v1325_v63  ;;  %v1523_v4 = vrot.slane %v1522_v45, 2 }
 0x18c   : > { %v1328_v35 = vrot.slane %v1327_v7, 1  ;;  %v1524_v55 = vadd.f32 %v1523_v4, %v1522_v45 }
 0x18e   : > { %v1329_v12 = vadd.f32 %v1328_v35, %v1327_v7  ;;  %v1525_v52 = vrot.slane %v1524_v55, 1 }
 0x190   : > { %1527 = vst.msk [vmem:[%s229_s7] sm:$0xff] %vm745_vm2, %v1329_v12  ;;  %v1526_v5 = vadd.f32 %v1525_v52, %v1524_v55 }
 0x191   : > { %1897 = shalt.err (!%p1894_p3)
}
 0x192   : > { %s1898_s6 = scalar_lea.hbm %s3164_s13, 128  ;;  %s1902_s12 = scalar_lea.hbm %s3243_s4, 256 }
 0x193   : > { %p1899_p4 = scmp.ne.s32.totalorder %s3164_s13, %s1898_s6  ;;  %p1903_p9 = scmp.lt.u32.totalorder %s3164_s13, %s3243_s4 }
 0x194   : > { %p1904_p10 = scmp.lt.u32.totalorder %s1902_s12, %s1898_s6  ;;  %p1906_p12 = scmp.lt.u32.totalorder %s1898_s6, %s3164_s13 }
 0x195   : > { %p1900_p7 = pnand %p1899_p4, %p2050_p5 }
 0x196   : > { %p1905_p11 = por %p1904_p10, %p1903_p9 }
 0x197   : > { %p1901_p8 = pneg %p1900_p7 }
 0x198   : > { %p1907_p13 = por %p1906_p12, %p1905_p11 }
 0x19a   : > { %p1908_p0 = pnand %p1907_p13, %p1901_p8 }
 0x19c   : > { %1911 = shalt.err (!%p1908_p0)
}
 0x19d   : > { %1839 = dma.vmem_to_hbm [thread:$0]  (%p2050_p5), %s3166_s8, 128, %s3164_s13, %s1535_s16   ;;  %1528 = vst.msk [vmem:[%s3158_s9] sm:$0xff] %vm745_vm2, %v1526_v5 }
 0x19e   : > { %s1540_s17 = scalar_lea.sflag [#allocation5], %s3153_s26  ;;  %s1912_s23 = scalar_lea.vmem %s3174_s10, 128 }
 0x19f   : > { %p1913_p1 = scmp.ne.s32.totalorder %s3174_s10, %s1912_s23  ;;  %s1981_s25 = smov [#allocation4]  }
 0x1a0   : > { %s1916_s30 = sshll.u32 %s1981_s25, 4  ;;  %s1917_s30 = int_to_ptr.vmem [resolvable:$false] %s1916_s30 }
 0x1a1   : > { %p1914_p2 = pnand %p1913_p1, %p2050_p5  ;;  %s1918_s6 = scalar_lea.vmem %s1917_s30, 256 }
 0x1a2   : > { %p1919_p4 = scmp.lt.s32.totalorder %s3174_s10, %s1917_s30  ;;  %p1920_p7 = scmp.lt.s32.totalorder %s1918_s6, %s1912_s23 }
 0x1a3   : > { %p1915_p3 = pneg %p1914_p2 }
 0x1a4   : > { %p1921_p8 = por %p1920_p7, %p1919_p4 }
 0x1a6   : > { %p1922_p9 = pnand %p1921_p8, %p1915_p3 }
 0x1a8   : > { %1925 = shalt.err (!%p1922_p9)
}
 0x1a9   : > { %s1926_s26 = scalar_lea.hbm %s3172_s15, 128  ;;  %s1930_s13 = scalar_lea.hbm %s3244_s5, 256 }
 0x1aa   : > { %p1927_p10 = scmp.ne.s32.totalorder %s3172_s15, %s1926_s26  ;;  %p1931_p13 = scmp.lt.u32.totalorder %s3172_s15, %s3244_s5 }
 0x1ab   : > { %p1932_p0 = scmp.lt.u32.totalorder %s1930_s13, %s1926_s26  ;;  %p1934_p2 = scmp.lt.u32.totalorder %s1926_s26, %s3172_s15 }
 0x1ac   : > { %p1928_p11 = pnand %p1927_p10, %p2050_p5 }
 0x1ad   : > { %p1933_p1 = por %p1932_p0, %p1931_p13 }
 0x1ae   : > { %p1929_p12 = pneg %p1928_p11 }
 0x1af   : > { %p1935_p3 = por %p1934_p2, %p1933_p1 }
 0x1b1   : > { %p1936_p4 = pnand %p1935_p3, %p1929_p12 }
 0x1b3   : > { %1939 = shalt.err (!%p1936_p4)
}
 0x1b4   : > { %1840 = dma.vmem_to_hbm [thread:$0]  (%p2050_p5), %s3174_s10, 128, %s3172_s15, %s1540_s17  }
 0x1b5 PF: > { %p1850_p7 = scmp.ge.s32.totalorder %s1978_s21, 2  ;;  %s1590_s11 = sand.u32 1, %s1966_s18  }
 0x1b6   : > { %s1591_s12 = scalar_lea.sflag [#allocation3], %s1590_s11 }
 0x1b7   : > { %p1844_p8 = pnand %p1850_p7, %p2054_p6 }
 0x1b9   : > { %1957 = dma.done.wait (!%p1844_p8), %s1591_s12, 128  }
 0x1ba   : > { %1959 = vsyncadd (!%p1844_p8), %s1591_s12, 4294967168  ;;  %s1600_s22 = scalar_lea.sflag [#allocation5], %s1590_s11 }
 0x1bb   : > { %1961 = dma.done.wait (!%p1844_p8), %s1600_s22, 128  }
 0x1bc   : > { %1963 = vsyncadd (!%p1844_p8), %s1600_s22, 4294967168  ;;  %p19_p5 = scmp.ge.s32.totalorder %s2037_s24, 4   ;;  %s3269_s18 = smov %s1970_s19 }
 0x1bd   : > { %s3270_s19 = smov %s1974_s20  ;;  %s3271_s20 = smov %s2048_s27 }
 0x1be   : > { %s3272_s21 = smov %s2037_s24  ;;  %21 = sbr.rel (!%p19_p5) target bundleno = 5 (0x5), region = 96 }
 0x1c5   :  { %1605 = vsyncpa [#allocation3], 1 }
 0x1c6   :  { %1607 = vsyncpa [#allocation3 + $0x1], 1 }
 0x1c7   :  { %1608 = vsyncpa [#allocation5], 1 }
 0x1c8   :  { %1610 = vsyncpa [#allocation5 + $0x1], 1 }

</bundles_post_ra>
